<compile_context>
chip_gen: v6e
topology: v6e:2x2x1
jax: 0.10.0
libtpu: 0.0.40
codegen_flags: <defaults>
</compile_context>

<pallas_src>
import functools
import numpy as np
import jax
import jax.numpy as jnp
from jax.experimental import pallas as pl
from jax.experimental.pallas import tpu as pltpu

_SUBLANE = 8
_LANE = 128


def _round_up(n, m):
    return ((n + m - 1) // m) * m


def _sigmoid1pass(x):
    # sigmoid(x) = 0.5 * tanh(0.5 * x) + 0.5  -> one EUP pass (tanh) per call.
    return 0.5 * jnp.tanh(0.5 * x) + 0.5


def lstm_kernel(x_ref, len_ref, wih_ref, whh_ref, b_ref, wfc_ref, bfc_ref,
                out_ref, xp_ref, *, T, B, H):
    """Single-invocation LSTM recurrence + linear head.

    x_ref   : (T*B, Dp)  bf16 time-major inputs (row t*B + b), D zero-padded
    len_ref : (B, 1)     int32 valid lengths (0 for padded batch rows)
    wih_ref : (Dp, 4H)   bf16 W_ih^T, gate columns [i, f, o, g], H zero-padded
    whh_ref : (H, 4H)    bf16 W_hh^T, same gate order / padding
    b_ref   : (1, 4H)    f32  b_ih + b_hh, same gate order / padding
    wfc_ref : (1, H)     f32  fc weight row (zero-padded)
    bfc_ref : (1, 1)     f32  fc bias
    out_ref : (B, 1)     f32  output
    xp_ref  : (T*B, 4H)  f32  VMEM scratch for the hoisted input projection
    """
    # Hoisted input projection for ALL timesteps: one bf16 MXU matmul with f32
    # accumulation, off the serial critical path of the recurrence.
    xp_ref[...] = (
        jnp.dot(x_ref[...], wih_ref[...], preferred_element_type=jnp.float32)
        + b_ref[...])                                     # (T*B, 4H) f32

    lengths = len_ref[...]                                # (B, 1) int32
    h = jnp.zeros((B, H), jnp.float32)
    c = jnp.zeros((B, H), jnp.float32)

    # Serial recurrence, fully unrolled (T small & static) so the LLO scheduler
    # sees across timesteps.  Only h @ W_hh remains on the serial path.
    for t in range(T):
        gx = xp_ref[t * B:(t + 1) * B, :]                 # static, tile-aligned
        gates = gx + jnp.dot(h.astype(jnp.bfloat16), whh_ref[...],
                             preferred_element_type=jnp.float32)  # (B, 4H) f32

        # Gate order [i, f, o, g]; with H = 128 every slice is a full vreg.
        sig = _sigmoid1pass(gates[:, :3 * H])
        i_g = sig[:, 0 * H:1 * H]
        f_g = sig[:, 1 * H:2 * H]
        o_g = sig[:, 2 * H:3 * H]
        g_g = jnp.tanh(gates[:, 3 * H:4 * H])

        c_new = f_g * c + i_g * g_g
        h_new = o_g * jnp.tanh(c_new)

        # pack_padded_sequence semantics: state only advances while t < length.
        # Select (not arithmetic mask) so padded-step values cannot leak.
        active = t < lengths                              # (B, 1) bool
        c = jnp.where(active, c_new, c)
        h = jnp.where(active, h_new, h)

    # Linear head: VPU multiply + lane reduction (avoids a 1-column MXU matmul).
    out = jnp.sum(h * wfc_ref[...], axis=-1, keepdims=True) + bfc_ref[...]
    out_ref[...] = out.astype(out_ref.dtype)


def prepare_params(w_ih, w_hh, b_ih, b_hh, w_fc, b_fc,
                   d_pad=_LANE, h_pad=_LANE):
    """Convert PyTorch-layout params to the kernel layout (done once).

    PyTorch: w_ih (4H, D), w_hh (4H, H), b_* (4H,) with gate order [i, f, g, o];
             w_fc (1, H), b_fc (1,).
    Returns zero-padded, gate-reordered ([i, f, o, g]) tensors:
      wih_p (Dp, 4Hp) bf16, whh_p (Hp, 4Hp) bf16, bias_p (1, 4Hp) f32,
      wfc_p (1, Hp) f32, bfc (1, 1) f32.
    Zero padding keeps padded hidden units exactly 0 through the recurrence.
    """
    H = w_hh.shape[1]
    D = w_ih.shape[1]
    Hp, Dp = h_pad, d_pad
    assert Hp >= H and Dp >= D

    # PyTorch gate order [i, f, g, o] -> kernel order [i, f, o, g].
    perm = np.concatenate([np.arange(0, 2 * H),          # i, f
                           np.arange(3 * H, 4 * H),      # o
                           np.arange(2 * H, 3 * H)])     # g
    wih = jnp.transpose(w_ih)[:, perm]                   # (D, 4H)
    whh = jnp.transpose(w_hh)[:, perm]                   # (H, 4H)
    bias = (b_ih + b_hh)[perm].reshape(1, 4 * H)         # (1, 4H)

    def pad_gate_cols(w):                                 # (rows, 4H) -> (rows, 4Hp)
        blocks = [jnp.pad(w[:, g * H:(g + 1) * H], ((0, 0), (0, Hp - H)))
                  for g in range(4)]
        return jnp.concatenate(blocks, axis=1)

    wih_p = jnp.pad(pad_gate_cols(wih), ((0, Dp - D), (0, 0))).astype(jnp.bfloat16)
    whh_p = jnp.pad(pad_gate_cols(whh), ((0, Hp - H), (0, 0))).astype(jnp.bfloat16)
    bias_p = pad_gate_cols(bias).astype(jnp.float32)
    wfc_p = jnp.pad(w_fc.reshape(1, H), ((0, 0), (0, Hp - H))).astype(jnp.float32)
    bfc = b_fc.reshape(1, 1).astype(jnp.float32)
    return wih_p, whh_p, bias_p, wfc_p, bfc


@jax.jit
def stock_predictor_forward(x, lengths, wih_p, whh_p, bias_p, wfc_p, bfc):
    """x: (B, T, D) float32 (batch_first), lengths: (B,) int. Returns (B,)."""
    B, T, D = x.shape
    Dp = wih_p.shape[0]
    Hp = whh_p.shape[0]
    Bp = _round_up(B, _SUBLANE)                           # pad batch to 8 sublanes

    # One fused pad + transpose + reshape + bf16-cast chain: time-major 2D so
    # each timestep's rows are a tile-aligned 8-sublane slab, D lane-aligned.
    x_tm = (jnp.pad(x, ((0, Bp - B), (0, 0), (0, Dp - D)))
            .transpose(1, 0, 2)
            .reshape(T * Bp, Dp)
            .astype(jnp.bfloat16))
    len_p = jnp.pad(lengths.astype(jnp.int32), (0, Bp - B)).reshape(Bp, 1)

    kernel = functools.partial(lstm_kernel, T=T, B=Bp, H=Hp)
    vmem = pltpu.MemorySpace.VMEM

    out = pl.pallas_call(
        kernel,
        out_shape=jax.ShapeDtypeStruct((Bp, 1), jnp.float32),
        # No grid: single invocation, whole arrays resident in VMEM, no
        # pipelining machinery / double-buffered weight copies.
        in_specs=[
            pl.BlockSpec(memory_space=vmem),              # x (time-major, bf16)
            pl.BlockSpec(memory_space=vmem),              # lengths
            pl.BlockSpec(memory_space=vmem),              # W_ih^T (bf16)
            pl.BlockSpec(memory_space=vmem),              # W_hh^T (bf16)
            pl.BlockSpec(memory_space=vmem),              # bias (f32)
            pl.BlockSpec(memory_space=vmem),              # fc weight row
            pl.BlockSpec(memory_space=vmem),              # fc bias
        ],
        out_specs=pl.BlockSpec(memory_space=vmem),
        scratch_shapes=[pltpu.VMEM((T * Bp, 4 * Hp), jnp.float32)],
    )(x_tm, len_p, wih_p, whh_p, bias_p, wfc_p, bfc)

    return out[:B, 0]                                     # .squeeze(-1)
    # TODO(synk): if B or T grow large, add a "parallel" batch grid axis (v7x
    # 2-TC) and time-chunk the hoisted projection to respect v7x's 64 MiB VMEM.


def reference_forward(x, lengths, w_ih, w_hh, b_ih, b_hh, w_fc, b_fc):
    """Pure-JAX f32 mirror of the PyTorch module (gate order [i, f, g, o])."""
    B, T, D = x.shape
    H = w_hh.shape[1]
    h = jnp.zeros((B, H), jnp.float32)
    c = jnp.zeros((B, H), jnp.float32)
    for t in range(T):
        gates = x[:, t, :] @ w_ih.T + h @ w_hh.T + b_ih + b_hh
        i_g = jax.nn.sigmoid(gates[:, 0 * H:1 * H])
        f_g = jax.nn.sigmoid(gates[:, 1 * H:2 * H])
        g_g = jnp.tanh(gates[:, 2 * H:3 * H])
        o_g = jax.nn.sigmoid(gates[:, 3 * H:4 * H])
        c_new = f_g * c + i_g * g_g
        h_new = o_g * jnp.tanh(c_new)
        m = (t < lengths)[:, None]
        c = jnp.where(m, c_new, c)
        h = jnp.where(m, h_new, h)
    return (h @ w_fc.T + b_fc)[:, 0]


if __name__ == "__main__":
    # Small shapes consistent with the module defaults: input_dim=42, hidden=64.
    B, T, D, H = 4, 8, 42, 64

    key = jax.random.PRNGKey(0)
    ks = jax.random.split(key, 7)
    scale = 1.0 / np.sqrt(H)

    # PyTorch-layout parameters (deterministic synthetic uniform(-1/sqrt(H), 1/sqrt(H))).
    w_ih = jax.random.uniform(ks[0], (4 * H, D), jnp.float32, -scale, scale)
    w_hh = jax.random.uniform(ks[1], (4 * H, H), jnp.float32, -scale, scale)
    b_ih = jax.random.uniform(ks[2], (4 * H,), jnp.float32, -scale, scale)
    b_hh = jax.random.uniform(ks[3], (4 * H,), jnp.float32, -scale, scale)
    w_fc = jax.random.uniform(ks[4], (1, H), jnp.float32, -scale, scale)
    b_fc = jax.random.uniform(ks[5], (1,), jnp.float32, -scale, scale)

    # Inputs (variable valid lengths, as pack_padded_sequence would see).
    x = jax.random.normal(ks[6], (B, T, D), jnp.float32)
    lengths = jnp.array([8, 5, 3, 6], dtype=jnp.int32)

    params = prepare_params(w_ih, w_hh, b_ih, b_hh, w_fc, b_fc)
    out = stock_predictor_forward(x, lengths, *params)
    out = jax.block_until_ready(out)

    ref = reference_forward(x, lengths, w_ih, w_hh, b_ih, b_hh, w_fc, b_fc)
    # Tolerance accounts for bf16 MXU operands (f32 accumulation / elementwise).
    np.testing.assert_allclose(np.asarray(out), np.asarray(ref),
                               atol=2e-2, rtol=2e-2)
    assert out.shape == (B,)
    print("KERNEL_OK")
</pallas_src>

<mosaic_0001>
module attributes {stable_mosaic.version = 11 : i64} {
  func.func @lstm_kernel(%arg0: memref<64x128xbf16, #tpu.memory_space<vmem>>, %arg1: memref<8x1xi32, #tpu.memory_space<vmem>>, %arg2: memref<128x512xbf16, #tpu.memory_space<vmem>>, %arg3: memref<128x512xbf16, #tpu.memory_space<vmem>>, %arg4: memref<1x512xf32, #tpu.memory_space<vmem>>, %arg5: memref<1x128xf32, #tpu.memory_space<vmem>>, %arg6: memref<1x1xf32, #tpu.memory_space<vmem>>, %arg7: memref<8x1xf32, #tpu.memory_space<vmem>>, %arg8: memref<64x512xf32, #tpu.memory_space<vmem>>) attributes {dimension_semantics = [], scalar_prefetch = 0 : i64, scratch_operands = 1 : i64, tpu.core_type = #tpu.core_type<tc>} {
    %c0 = arith.constant 0 : index
    %c0_0 = arith.constant 0 : index
    %0 = vector.load %arg0[%c0, %c0_0] : memref<64x128xbf16, #tpu.memory_space<vmem>>, vector<64x128xbf16>
    %c0_1 = arith.constant 0 : index
    %c0_2 = arith.constant 0 : index
    %1 = vector.load %arg2[%c0_1, %c0_2] : memref<128x512xbf16, #tpu.memory_space<vmem>>, vector<128x512xbf16>
    %cst = arith.constant dense<0.000000e+00> : vector<64x512xf32>
    %2 = tpu.matmul %0, %1, %cst {dimension_numbers = #tpu.dot_dimension_numbers<[1], [0], [0], [1], [0, 0, 1, 1], [], []>} : vector<64x128xbf16>, vector<128x512xbf16>, vector<64x512xf32> -> vector<64x512xf32>
    %c0_3 = arith.constant 0 : index
    %c0_4 = arith.constant 0 : index
    %3 = vector.load %arg4[%c0_3, %c0_4] : memref<1x512xf32, #tpu.memory_space<vmem>>, vector<1x512xf32>
    %4 = vector.broadcast %3 : vector<1x512xf32> to vector<64x512xf32>
    %5 = arith.addf %2, %4 : vector<64x512xf32>
    %c0_5 = arith.constant 0 : index
    %c0_6 = arith.constant 0 : index
    %6 = vector.load %arg8[%c0_5, %c0_6] : memref<64x512xf32, #tpu.memory_space<vmem>>, vector<64x512xf32>
    tpu.vector_store %arg8[%c0_5, %c0_6], %5 {strides = array<i32>} : memref<64x512xf32, #tpu.memory_space<vmem>>, vector<64x512xf32>,
    %c0_7 = arith.constant 0 : index
    %c0_8 = arith.constant 0 : index
    %7 = vector.load %arg1[%c0_7, %c0_8] : memref<8x1xi32, #tpu.memory_space<vmem>>, vector<8x1xi32>
    %cst_9 = arith.constant 0.000000e+00 : f32
    %8 = vector.broadcast %cst_9 : f32 to vector<8x128xf32>
    %cst_10 = arith.constant 0.000000e+00 : f32
    %9 = vector.broadcast %cst_10 : f32 to vector<8x128xf32>
    %c0_11 = arith.constant 0 : index
    %c0_12 = arith.constant 0 : index
    %10 = vector.load %arg8[%c0_11, %c0_12] : memref<64x512xf32, #tpu.memory_space<vmem>>, vector<8x512xf32>
    %11 = arith.truncf %8 : vector<8x128xf32> to vector<8x128xbf16>
    %c0_13 = arith.constant 0 : index
    %c0_14 = arith.constant 0 : index
    %12 = vector.load %arg3[%c0_13, %c0_14] : memref<128x512xbf16, #tpu.memory_space<vmem>>, vector<128x512xbf16>
    %cst_15 = arith.constant dense<0.000000e+00> : vector<8x512xf32>
    %13 = tpu.matmul %11, %12, %cst_15 {dimension_numbers = #tpu.dot_dimension_numbers<[1], [0], [0], [1], [0, 0, 1, 1], [], []>} : vector<8x128xbf16>, vector<128x512xbf16>, vector<8x512xf32> -> vector<8x512xf32>
    %14 = arith.addf %10, %13 : vector<8x512xf32>
    %15 = vector.extract_strided_slice %14 {offsets = [0, 0], sizes = [8, 384], strides = [1, 1]} : vector<8x512xf32> to vector<8x384xf32>
    %cst_16 = arith.constant 5.000000e-01 : f32
    %16 = vector.broadcast %cst_16 : f32 to vector<8x384xf32>
    %17 = arith.mulf %16, %15 : vector<8x384xf32>
    %18 = math.tanh %17 : vector<8x384xf32>
    %cst_17 = arith.constant 5.000000e-01 : f32
    %19 = vector.broadcast %cst_17 : f32 to vector<8x384xf32>
    %20 = arith.mulf %19, %18 : vector<8x384xf32>
    %cst_18 = arith.constant 5.000000e-01 : f32
    %21 = vector.broadcast %cst_18 : f32 to vector<8x384xf32>
    %22 = arith.addf %20, %21 : vector<8x384xf32>
    %23 = vector.extract_strided_slice %22 {offsets = [0, 0], sizes = [8, 128], strides = [1, 1]} : vector<8x384xf32> to vector<8x128xf32>
    %24 = vector.extract_strided_slice %22 {offsets = [0, 128], sizes = [8, 128], strides = [1, 1]} : vector<8x384xf32> to vector<8x128xf32>
    %25 = vector.extract_strided_slice %22 {offsets = [0, 256], sizes = [8, 128], strides = [1, 1]} : vector<8x384xf32> to vector<8x128xf32>
    %26 = vector.extract_strided_slice %14 {offsets = [0, 384], sizes = [8, 128], strides = [1, 1]} : vector<8x512xf32> to vector<8x128xf32>
    %27 = math.tanh %26 : vector<8x128xf32>
    %28 = arith.mulf %24, %9 : vector<8x128xf32>
    %29 = arith.mulf %23, %27 : vector<8x128xf32>
    %30 = arith.addf %28, %29 : vector<8x128xf32>
    %31 = math.tanh %30 : vector<8x128xf32>
    %32 = arith.mulf %25, %31 : vector<8x128xf32>
    %c0_i32 = arith.constant 0 : i32
    %33 = vector.broadcast %c0_i32 : i32 to vector<8x1xi32>
    %34 = arith.cmpi sgt, %7, %33 : vector<8x1xi32>
    %35 = vector.shape_cast %34 : vector<8x1xi1> to vector<8x1xi1>
    %36 = vector.broadcast %35 : vector<8x1xi1> to vector<8x128xi1>
    %37 = arith.select %36, %30, %9 : vector<8x128xi1>, vector<8x128xf32>
    %38 = vector.shape_cast %34 : vector<8x1xi1> to vector<8x1xi1>
    %39 = vector.broadcast %38 : vector<8x1xi1> to vector<8x128xi1>
    %40 = arith.select %39, %32, %8 : vector<8x128xi1>, vector<8x128xf32>
    %c8 = arith.constant 8 : index
    %c0_19 = arith.constant 0 : index
    %41 = vector.load %arg8[%c8, %c0_19] : memref<64x512xf32, #tpu.memory_space<vmem>>, vector<8x512xf32>
    %42 = arith.truncf %40 : vector<8x128xf32> to vector<8x128xbf16>
    %c0_20 = arith.constant 0 : index
    %c0_21 = arith.constant 0 : index
    %43 = vector.load %arg3[%c0_20, %c0_21] : memref<128x512xbf16, #tpu.memory_space<vmem>>, vector<128x512xbf16>
    %cst_22 = arith.constant dense<0.000000e+00> : vector<8x512xf32>
    %44 = tpu.matmul %42, %43, %cst_22 {dimension_numbers = #tpu.dot_dimension_numbers<[1], [0], [0], [1], [0, 0, 1, 1], [], []>} : vector<8x128xbf16>, vector<128x512xbf16>, vector<8x512xf32> -> vector<8x512xf32>
    %45 = arith.addf %41, %44 : vector<8x512xf32>
    %46 = vector.extract_strided_slice %45 {offsets = [0, 0], sizes = [8, 384], strides = [1, 1]} : vector<8x512xf32> to vector<8x384xf32>
    %cst_23 = arith.constant 5.000000e-01 : f32
    %47 = vector.broadcast %cst_23 : f32 to vector<8x384xf32>
    %48 = arith.mulf %47, %46 : vector<8x384xf32>
    %49 = math.tanh %48 : vector<8x384xf32>
    %cst_24 = arith.constant 5.000000e-01 : f32
    %50 = vector.broadcast %cst_24 : f32 to vector<8x384xf32>
    %51 = arith.mulf %50, %49 : vector<8x384xf32>
    %cst_25 = arith.constant 5.000000e-01 : f32
    %52 = vector.broadcast %cst_25 : f32 to vector<8x384xf32>
    %53 = arith.addf %51, %52 : vector<8x384xf32>
    %54 = vector.extract_strided_slice %53 {offsets = [0, 0], sizes = [8, 128], strides = [1, 1]} : vector<8x384xf32> to vector<8x128xf32>
    %55 = vector.extract_strided_slice %53 {offsets = [0, 128], sizes = [8, 128], strides = [1, 1]} : vector<8x384xf32> to vector<8x128xf32>
    %56 = vector.extract_strided_slice %53 {offsets = [0, 256], sizes = [8, 128], strides = [1, 1]} : vector<8x384xf32> to vector<8x128xf32>
    %57 = vector.extract_strided_slice %45 {offsets = [0, 384], sizes = [8, 128], strides = [1, 1]} : vector<8x512xf32> to vector<8x128xf32>
    %58 = math.tanh %57 : vector<8x128xf32>
    %59 = arith.mulf %55, %37 : vector<8x128xf32>
    %60 = arith.mulf %54, %58 : vector<8x128xf32>
    %61 = arith.addf %59, %60 : vector<8x128xf32>
    %62 = math.tanh %61 : vector<8x128xf32>
    %63 = arith.mulf %56, %62 : vector<8x128xf32>
    %c1_i32 = arith.constant 1 : i32
    %64 = vector.broadcast %c1_i32 : i32 to vector<8x1xi32>
    %65 = arith.cmpi sgt, %7, %64 : vector<8x1xi32>
    %66 = vector.shape_cast %65 : vector<8x1xi1> to vector<8x1xi1>
    %67 = vector.broadcast %66 : vector<8x1xi1> to vector<8x128xi1>
    %68 = arith.select %67, %61, %37 : vector<8x128xi1>, vector<8x128xf32>
    %69 = vector.shape_cast %65 : vector<8x1xi1> to vector<8x1xi1>
    %70 = vector.broadcast %69 : vector<8x1xi1> to vector<8x128xi1>
    %71 = arith.select %70, %63, %40 : vector<8x128xi1>, vector<8x128xf32>
    %c16 = arith.constant 16 : index
    %c0_26 = arith.constant 0 : index
    %72 = vector.load %arg8[%c16, %c0_26] : memref<64x512xf32, #tpu.memory_space<vmem>>, vector<8x512xf32>
    %73 = arith.truncf %71 : vector<8x128xf32> to vector<8x128xbf16>
    %c0_27 = arith.constant 0 : index
    %c0_28 = arith.constant 0 : index
    %74 = vector.load %arg3[%c0_27, %c0_28] : memref<128x512xbf16, #tpu.memory_space<vmem>>, vector<128x512xbf16>
    %cst_29 = arith.constant dense<0.000000e+00> : vector<8x512xf32>
    %75 = tpu.matmul %73, %74, %cst_29 {dimension_numbers = #tpu.dot_dimension_numbers<[1], [0], [0], [1], [0, 0, 1, 1], [], []>} : vector<8x128xbf16>, vector<128x512xbf16>, vector<8x512xf32> -> vector<8x512xf32>
    %76 = arith.addf %72, %75 : vector<8x512xf32>
    %77 = vector.extract_strided_slice %76 {offsets = [0, 0], sizes = [8, 384], strides = [1, 1]} : vector<8x512xf32> to vector<8x384xf32>
    %cst_30 = arith.constant 5.000000e-01 : f32
    %78 = vector.broadcast %cst_30 : f32 to vector<8x384xf32>
    %79 = arith.mulf %78, %77 : vector<8x384xf32>
    %80 = math.tanh %79 : vector<8x384xf32>
    %cst_31 = arith.constant 5.000000e-01 : f32
    %81 = vector.broadcast %cst_31 : f32 to vector<8x384xf32>
    %82 = arith.mulf %81, %80 : vector<8x384xf32>
    %cst_32 = arith.constant 5.000000e-01 : f32
    %83 = vector.broadcast %cst_32 : f32 to vector<8x384xf32>
    %84 = arith.addf %82, %83 : vector<8x384xf32>
    %85 = vector.extract_strided_slice %84 {offsets = [0, 0], sizes = [8, 128], strides = [1, 1]} : vector<8x384xf32> to vector<8x128xf32>
    %86 = vector.extract_strided_slice %84 {offsets = [0, 128], sizes = [8, 128], strides = [1, 1]} : vector<8x384xf32> to vector<8x128xf32>
    %87 = vector.extract_strided_slice %84 {offsets = [0, 256], sizes = [8, 128], strides = [1, 1]} : vector<8x384xf32> to vector<8x128xf32>
    %88 = vector.extract_strided_slice %76 {offsets = [0, 384], sizes = [8, 128], strides = [1, 1]} : vector<8x512xf32> to vector<8x128xf32>
    %89 = math.tanh %88 : vector<8x128xf32>
    %90 = arith.mulf %86, %68 : vector<8x128xf32>
    %91 = arith.mulf %85, %89 : vector<8x128xf32>
    %92 = arith.addf %90, %91 : vector<8x128xf32>
    %93 = math.tanh %92 : vector<8x128xf32>
    %94 = arith.mulf %87, %93 : vector<8x128xf32>
    %c2_i32 = arith.constant 2 : i32
    %95 = vector.broadcast %c2_i32 : i32 to vector<8x1xi32>
    %96 = arith.cmpi sgt, %7, %95 : vector<8x1xi32>
    %97 = vector.shape_cast %96 : vector<8x1xi1> to vector<8x1xi1>
    %98 = vector.broadcast %97 : vector<8x1xi1> to vector<8x128xi1>
    %99 = arith.select %98, %92, %68 : vector<8x128xi1>, vector<8x128xf32>
    %100 = vector.shape_cast %96 : vector<8x1xi1> to vector<8x1xi1>
    %101 = vector.broadcast %100 : vector<8x1xi1> to vector<8x128xi1>
    %102 = arith.select %101, %94, %71 : vector<8x128xi1>, vector<8x128xf32>
    %c24 = arith.constant 24 : index
    %c0_33 = arith.constant 0 : index
    %103 = vector.load %arg8[%c24, %c0_33] : memref<64x512xf32, #tpu.memory_space<vmem>>, vector<8x512xf32>
    %104 = arith.truncf %102 : vector<8x128xf32> to vector<8x128xbf16>
    %c0_34 = arith.constant 0 : index
    %c0_35 = arith.constant 0 : index
    %105 = vector.load %arg3[%c0_34, %c0_35] : memref<128x512xbf16, #tpu.memory_space<vmem>>, vector<128x512xbf16>
    %cst_36 = arith.constant dense<0.000000e+00> : vector<8x512xf32>
    %106 = tpu.matmul %104, %105, %cst_36 {dimension_numbers = #tpu.dot_dimension_numbers<[1], [0], [0], [1], [0, 0, 1, 1], [], []>} : vector<8x128xbf16>, vector<128x512xbf16>, vector<8x512xf32> -> vector<8x512xf32>
    %107 = arith.addf %103, %106 : vector<8x512xf32>
    %108 = vector.extract_strided_slice %107 {offsets = [0, 0], sizes = [8, 384], strides = [1, 1]} : vector<8x512xf32> to vector<8x384xf32>
    %cst_37 = arith.constant 5.000000e-01 : f32
    %109 = vector.broadcast %cst_37 : f32 to vector<8x384xf32>
    %110 = arith.mulf %109, %108 : vector<8x384xf32>
    %111 = math.tanh %110 : vector<8x384xf32>
    %cst_38 = arith.constant 5.000000e-01 : f32
    %112 = vector.broadcast %cst_38 : f32 to vector<8x384xf32>
    %113 = arith.mulf %112, %111 : vector<8x384xf32>
    %cst_39 = arith.constant 5.000000e-01 : f32
    %114 = vector.broadcast %cst_39 : f32 to vector<8x384xf32>
    %115 = arith.addf %113, %114 : vector<8x384xf32>
    %116 = vector.extract_strided_slice %115 {offsets = [0, 0], sizes = [8, 128], strides = [1, 1]} : vector<8x384xf32> to vector<8x128xf32>
    %117 = vector.extract_strided_slice %115 {offsets = [0, 128], sizes = [8, 128], strides = [1, 1]} : vector<8x384xf32> to vector<8x128xf32>
    %118 = vector.extract_strided_slice %115 {offsets = [0, 256], sizes = [8, 128], strides = [1, 1]} : vector<8x384xf32> to vector<8x128xf32>
    %119 = vector.extract_strided_slice %107 {offsets = [0, 384], sizes = [8, 128], strides = [1, 1]} : vector<8x512xf32> to vector<8x128xf32>
    %120 = math.tanh %119 : vector<8x128xf32>
    %121 = arith.mulf %117, %99 : vector<8x128xf32>
    %122 = arith.mulf %116, %120 : vector<8x128xf32>
    %123 = arith.addf %121, %122 : vector<8x128xf32>
    %124 = math.tanh %123 : vector<8x128xf32>
    %125 = arith.mulf %118, %124 : vector<8x128xf32>
    %c3_i32 = arith.constant 3 : i32
    %126 = vector.broadcast %c3_i32 : i32 to vector<8x1xi32>
    %127 = arith.cmpi sgt, %7, %126 : vector<8x1xi32>
    %128 = vector.shape_cast %127 : vector<8x1xi1> to vector<8x1xi1>
    %129 = vector.broadcast %128 : vector<8x1xi1> to vector<8x128xi1>
    %130 = arith.select %129, %123, %99 : vector<8x128xi1>, vector<8x128xf32>
    %131 = vector.shape_cast %127 : vector<8x1xi1> to vector<8x1xi1>
    %132 = vector.broadcast %131 : vector<8x1xi1> to vector<8x128xi1>
    %133 = arith.select %132, %125, %102 : vector<8x128xi1>, vector<8x128xf32>
    %c32 = arith.constant 32 : index
    %c0_40 = arith.constant 0 : index
    %134 = vector.load %arg8[%c32, %c0_40] : memref<64x512xf32, #tpu.memory_space<vmem>>, vector<8x512xf32>
    %135 = arith.truncf %133 : vector<8x128xf32> to vector<8x128xbf16>
    %c0_41 = arith.constant 0 : index
    %c0_42 = arith.constant 0 : index
    %136 = vector.load %arg3[%c0_41, %c0_42] : memref<128x512xbf16, #tpu.memory_space<vmem>>, vector<128x512xbf16>
    %cst_43 = arith.constant dense<0.000000e+00> : vector<8x512xf32>
    %137 = tpu.matmul %135, %136, %cst_43 {dimension_numbers = #tpu.dot_dimension_numbers<[1], [0], [0], [1], [0, 0, 1, 1], [], []>} : vector<8x128xbf16>, vector<128x512xbf16>, vector<8x512xf32> -> vector<8x512xf32>
    %138 = arith.addf %134, %137 : vector<8x512xf32>
    %139 = vector.extract_strided_slice %138 {offsets = [0, 0], sizes = [8, 384], strides = [1, 1]} : vector<8x512xf32> to vector<8x384xf32>
    %cst_44 = arith.constant 5.000000e-01 : f32
    %140 = vector.broadcast %cst_44 : f32 to vector<8x384xf32>
    %141 = arith.mulf %140, %139 : vector<8x384xf32>
    %142 = math.tanh %141 : vector<8x384xf32>
    %cst_45 = arith.constant 5.000000e-01 : f32
    %143 = vector.broadcast %cst_45 : f32 to vector<8x384xf32>
    %144 = arith.mulf %143, %142 : vector<8x384xf32>
    %cst_46 = arith.constant 5.000000e-01 : f32
    %145 = vector.broadcast %cst_46 : f32 to vector<8x384xf32>
    %146 = arith.addf %144, %145 : vector<8x384xf32>
    %147 = vector.extract_strided_slice %146 {offsets = [0, 0], sizes = [8, 128], strides = [1, 1]} : vector<8x384xf32> to vector<8x128xf32>
    %148 = vector.extract_strided_slice %146 {offsets = [0, 128], sizes = [8, 128], strides = [1, 1]} : vector<8x384xf32> to vector<8x128xf32>
    %149 = vector.extract_strided_slice %146 {offsets = [0, 256], sizes = [8, 128], strides = [1, 1]} : vector<8x384xf32> to vector<8x128xf32>
    %150 = vector.extract_strided_slice %138 {offsets = [0, 384], sizes = [8, 128], strides = [1, 1]} : vector<8x512xf32> to vector<8x128xf32>
    %151 = math.tanh %150 : vector<8x128xf32>
    %152 = arith.mulf %148, %130 : vector<8x128xf32>
    %153 = arith.mulf %147, %151 : vector<8x128xf32>
    %154 = arith.addf %152, %153 : vector<8x128xf32>
    %155 = math.tanh %154 : vector<8x128xf32>
    %156 = arith.mulf %149, %155 : vector<8x128xf32>
    %c4_i32 = arith.constant 4 : i32
    %157 = vector.broadcast %c4_i32 : i32 to vector<8x1xi32>
    %158 = arith.cmpi sgt, %7, %157 : vector<8x1xi32>
    %159 = vector.shape_cast %158 : vector<8x1xi1> to vector<8x1xi1>
    %160 = vector.broadcast %159 : vector<8x1xi1> to vector<8x128xi1>
    %161 = arith.select %160, %154, %130 : vector<8x128xi1>, vector<8x128xf32>
    %162 = vector.shape_cast %158 : vector<8x1xi1> to vector<8x1xi1>
    %163 = vector.broadcast %162 : vector<8x1xi1> to vector<8x128xi1>
    %164 = arith.select %163, %156, %133 : vector<8x128xi1>, vector<8x128xf32>
    %c40 = arith.constant 40 : index
    %c0_47 = arith.constant 0 : index
    %165 = vector.load %arg8[%c40, %c0_47] : memref<64x512xf32, #tpu.memory_space<vmem>>, vector<8x512xf32>
    %166 = arith.truncf %164 : vector<8x128xf32> to vector<8x128xbf16>
    %c0_48 = arith.constant 0 : index
    %c0_49 = arith.constant 0 : index
    %167 = vector.load %arg3[%c0_48, %c0_49] : memref<128x512xbf16, #tpu.memory_space<vmem>>, vector<128x512xbf16>
    %cst_50 = arith.constant dense<0.000000e+00> : vector<8x512xf32>
    %168 = tpu.matmul %166, %167, %cst_50 {dimension_numbers = #tpu.dot_dimension_numbers<[1], [0], [0], [1], [0, 0, 1, 1], [], []>} : vector<8x128xbf16>, vector<128x512xbf16>, vector<8x512xf32> -> vector<8x512xf32>
    %169 = arith.addf %165, %168 : vector<8x512xf32>
    %170 = vector.extract_strided_slice %169 {offsets = [0, 0], sizes = [8, 384], strides = [1, 1]} : vector<8x512xf32> to vector<8x384xf32>
    %cst_51 = arith.constant 5.000000e-01 : f32
    %171 = vector.broadcast %cst_51 : f32 to vector<8x384xf32>
    %172 = arith.mulf %171, %170 : vector<8x384xf32>
    %173 = math.tanh %172 : vector<8x384xf32>
    %cst_52 = arith.constant 5.000000e-01 : f32
    %174 = vector.broadcast %cst_52 : f32 to vector<8x384xf32>
    %175 = arith.mulf %174, %173 : vector<8x384xf32>
    %cst_53 = arith.constant 5.000000e-01 : f32
    %176 = vector.broadcast %cst_53 : f32 to vector<8x384xf32>
    %177 = arith.addf %175, %176 : vector<8x384xf32>
    %178 = vector.extract_strided_slice %177 {offsets = [0, 0], sizes = [8, 128], strides = [1, 1]} : vector<8x384xf32> to vector<8x128xf32>
    %179 = vector.extract_strided_slice %177 {offsets = [0, 128], sizes = [8, 128], strides = [1, 1]} : vector<8x384xf32> to vector<8x128xf32>
    %180 = vector.extract_strided_slice %177 {offsets = [0, 256], sizes = [8, 128], strides = [1, 1]} : vector<8x384xf32> to vector<8x128xf32>
    %181 = vector.extract_strided_slice %169 {offsets = [0, 384], sizes = [8, 128], strides = [1, 1]} : vector<8x512xf32> to vector<8x128xf32>
    %182 = math.tanh %181 : vector<8x128xf32>
    %183 = arith.mulf %179, %161 : vector<8x128xf32>
    %184 = arith.mulf %178, %182 : vector<8x128xf32>
    %185 = arith.addf %183, %184 : vector<8x128xf32>
    %186 = math.tanh %185 : vector<8x128xf32>
    %187 = arith.mulf %180, %186 : vector<8x128xf32>
    %c5_i32 = arith.constant 5 : i32
    %188 = vector.broadcast %c5_i32 : i32 to vector<8x1xi32>
    %189 = arith.cmpi sgt, %7, %188 : vector<8x1xi32>
    %190 = vector.shape_cast %189 : vector<8x1xi1> to vector<8x1xi1>
    %191 = vector.broadcast %190 : vector<8x1xi1> to vector<8x128xi1>
    %192 = arith.select %191, %185, %161 : vector<8x128xi1>, vector<8x128xf32>
    %193 = vector.shape_cast %189 : vector<8x1xi1> to vector<8x1xi1>
    %194 = vector.broadcast %193 : vector<8x1xi1> to vector<8x128xi1>
    %195 = arith.select %194, %187, %164 : vector<8x128xi1>, vector<8x128xf32>
    %c48 = arith.constant 48 : index
    %c0_54 = arith.constant 0 : index
    %196 = vector.load %arg8[%c48, %c0_54] : memref<64x512xf32, #tpu.memory_space<vmem>>, vector<8x512xf32>
    %197 = arith.truncf %195 : vector<8x128xf32> to vector<8x128xbf16>
    %c0_55 = arith.constant 0 : index
    %c0_56 = arith.constant 0 : index
    %198 = vector.load %arg3[%c0_55, %c0_56] : memref<128x512xbf16, #tpu.memory_space<vmem>>, vector<128x512xbf16>
    %cst_57 = arith.constant dense<0.000000e+00> : vector<8x512xf32>
    %199 = tpu.matmul %197, %198, %cst_57 {dimension_numbers = #tpu.dot_dimension_numbers<[1], [0], [0], [1], [0, 0, 1, 1], [], []>} : vector<8x128xbf16>, vector<128x512xbf16>, vector<8x512xf32> -> vector<8x512xf32>
    %200 = arith.addf %196, %199 : vector<8x512xf32>
    %201 = vector.extract_strided_slice %200 {offsets = [0, 0], sizes = [8, 384], strides = [1, 1]} : vector<8x512xf32> to vector<8x384xf32>
    %cst_58 = arith.constant 5.000000e-01 : f32
    %202 = vector.broadcast %cst_58 : f32 to vector<8x384xf32>
    %203 = arith.mulf %202, %201 : vector<8x384xf32>
    %204 = math.tanh %203 : vector<8x384xf32>
    %cst_59 = arith.constant 5.000000e-01 : f32
    %205 = vector.broadcast %cst_59 : f32 to vector<8x384xf32>
    %206 = arith.mulf %205, %204 : vector<8x384xf32>
    %cst_60 = arith.constant 5.000000e-01 : f32
    %207 = vector.broadcast %cst_60 : f32 to vector<8x384xf32>
    %208 = arith.addf %206, %207 : vector<8x384xf32>
    %209 = vector.extract_strided_slice %208 {offsets = [0, 0], sizes = [8, 128], strides = [1, 1]} : vector<8x384xf32> to vector<8x128xf32>
    %210 = vector.extract_strided_slice %208 {offsets = [0, 128], sizes = [8, 128], strides = [1, 1]} : vector<8x384xf32> to vector<8x128xf32>
    %211 = vector.extract_strided_slice %208 {offsets = [0, 256], sizes = [8, 128], strides = [1, 1]} : vector<8x384xf32> to vector<8x128xf32>
    %212 = vector.extract_strided_slice %200 {offsets = [0, 384], sizes = [8, 128], strides = [1, 1]} : vector<8x512xf32> to vector<8x128xf32>
    %213 = math.tanh %212 : vector<8x128xf32>
    %214 = arith.mulf %210, %192 : vector<8x128xf32>
    %215 = arith.mulf %209, %213 : vector<8x128xf32>
    %216 = arith.addf %214, %215 : vector<8x128xf32>
    %217 = math.tanh %216 : vector<8x128xf32>
    %218 = arith.mulf %211, %217 : vector<8x128xf32>
    %c6_i32 = arith.constant 6 : i32
    %219 = vector.broadcast %c6_i32 : i32 to vector<8x1xi32>
    %220 = arith.cmpi sgt, %7, %219 : vector<8x1xi32>
    %221 = vector.shape_cast %220 : vector<8x1xi1> to vector<8x1xi1>
    %222 = vector.broadcast %221 : vector<8x1xi1> to vector<8x128xi1>
    %223 = arith.select %222, %216, %192 : vector<8x128xi1>, vector<8x128xf32>
    %224 = vector.shape_cast %220 : vector<8x1xi1> to vector<8x1xi1>
    %225 = vector.broadcast %224 : vector<8x1xi1> to vector<8x128xi1>
    %226 = arith.select %225, %218, %195 : vector<8x128xi1>, vector<8x128xf32>
    %c56 = arith.constant 56 : index
    %c0_61 = arith.constant 0 : index
    %227 = vector.load %arg8[%c56, %c0_61] : memref<64x512xf32, #tpu.memory_space<vmem>>, vector<8x512xf32>
    %228 = arith.truncf %226 : vector<8x128xf32> to vector<8x128xbf16>
    %c0_62 = arith.constant 0 : index
    %c0_63 = arith.constant 0 : index
    %229 = vector.load %arg3[%c0_62, %c0_63] : memref<128x512xbf16, #tpu.memory_space<vmem>>, vector<128x512xbf16>
    %cst_64 = arith.constant dense<0.000000e+00> : vector<8x512xf32>
    %230 = tpu.matmul %228, %229, %cst_64 {dimension_numbers = #tpu.dot_dimension_numbers<[1], [0], [0], [1], [0, 0, 1, 1], [], []>} : vector<8x128xbf16>, vector<128x512xbf16>, vector<8x512xf32> -> vector<8x512xf32>
    %231 = arith.addf %227, %230 : vector<8x512xf32>
    %232 = vector.extract_strided_slice %231 {offsets = [0, 0], sizes = [8, 384], strides = [1, 1]} : vector<8x512xf32> to vector<8x384xf32>
    %cst_65 = arith.constant 5.000000e-01 : f32
    %233 = vector.broadcast %cst_65 : f32 to vector<8x384xf32>
    %234 = arith.mulf %233, %232 : vector<8x384xf32>
    %235 = math.tanh %234 : vector<8x384xf32>
    %cst_66 = arith.constant 5.000000e-01 : f32
    %236 = vector.broadcast %cst_66 : f32 to vector<8x384xf32>
    %237 = arith.mulf %236, %235 : vector<8x384xf32>
    %cst_67 = arith.constant 5.000000e-01 : f32
    %238 = vector.broadcast %cst_67 : f32 to vector<8x384xf32>
    %239 = arith.addf %237, %238 : vector<8x384xf32>
    %240 = vector.extract_strided_slice %239 {offsets = [0, 0], sizes = [8, 128], strides = [1, 1]} : vector<8x384xf32> to vector<8x128xf32>
    %241 = vector.extract_strided_slice %239 {offsets = [0, 128], sizes = [8, 128], strides = [1, 1]} : vector<8x384xf32> to vector<8x128xf32>
    %242 = vector.extract_strided_slice %239 {offsets = [0, 256], sizes = [8, 128], strides = [1, 1]} : vector<8x384xf32> to vector<8x128xf32>
    %243 = vector.extract_strided_slice %231 {offsets = [0, 384], sizes = [8, 128], strides = [1, 1]} : vector<8x512xf32> to vector<8x128xf32>
    %244 = math.tanh %243 : vector<8x128xf32>
    %245 = arith.mulf %241, %223 : vector<8x128xf32>
    %246 = arith.mulf %240, %244 : vector<8x128xf32>
    %247 = arith.addf %245, %246 : vector<8x128xf32>
    %248 = math.tanh %247 : vector<8x128xf32>
    %249 = arith.mulf %242, %248 : vector<8x128xf32>
    %c7_i32 = arith.constant 7 : i32
    %250 = vector.broadcast %c7_i32 : i32 to vector<8x1xi32>
    %251 = arith.cmpi sgt, %7, %250 : vector<8x1xi32>
    %252 = vector.shape_cast %251 : vector<8x1xi1> to vector<8x1xi1>
    %253 = vector.broadcast %252 : vector<8x1xi1> to vector<8x128xi1>
    %254 = arith.select %253, %249, %226 : vector<8x128xi1>, vector<8x128xf32>
    %c0_68 = arith.constant 0 : index
    %c0_69 = arith.constant 0 : index
    %255 = vector.load %arg5[%c0_68, %c0_69] : memref<1x128xf32, #tpu.memory_space<vmem>>, vector<1x128xf32>
    %256 = vector.broadcast %255 : vector<1x128xf32> to vector<8x128xf32>
    %257 = arith.mulf %254, %256 : vector<8x128xf32>
    %cst_70 = arith.constant dense<0.000000e+00> : vector<8xf32>
    %258 = vector.multi_reduction <add>, %257, %cst_70 [1] : vector<8x128xf32> to vector<8xf32>
    %259 = vector.shape_cast %258 : vector<8xf32> to vector<8x1xf32>
    %c0_71 = arith.constant 0 : index
    %c0_72 = arith.constant 0 : index
    %260 = vector.load %arg6[%c0_71, %c0_72] : memref<1x1xf32, #tpu.memory_space<vmem>>, vector<1x1xf32>
    %261 = vector.broadcast %260 : vector<1x1xf32> to vector<8x1xf32>
    %262 = arith.addf %259, %261 : vector<8x1xf32>
    %c0_73 = arith.constant 0 : index
    %c0_74 = arith.constant 0 : index
    %263 = vector.load %arg7[%c0_73, %c0_74] : memref<8x1xf32, #tpu.memory_space<vmem>>, vector<8x1xf32>
    tpu.vector_store %arg7[%c0_73, %c0_74], %262 {strides = array<i32>} : memref<8x1xf32, #tpu.memory_space<vmem>>, vector<8x1xf32>,
    return
  }
}

</mosaic_0001>

<bundles_post_ra>
// kernel: stock_predictor_forward.1
= control target key start
LH: loop header
LB: loop body
LE: loop exit
PB: predicated region body
PF: predicated region fallthrough
CT: control target
= control target key end

     0   :  { %s2661_s0 = inlined_call_operand.vmem [shape: bf16[64,128], index: 0, kind: input, shape index: {}]   ;;  %s2662_s1 = inlined_call_operand.vmem [shape: s32[8,1], index: 1, kind: input, shape index: {}]   ;;  %s2663_s2 = inlined_call_operand.hbm [shape: bf16[128,512], index: 2, kind: input, shape index: {}]   ;;  %s2664_s3 = inlined_call_operand.hbm [shape: bf16[128,512], index: 3, kind: input, shape index: {}]   ;;  %s2665_s4 = inlined_call_operand.vmem [shape: f32[1,512], index: 4, kind: input, shape index: {}]   ;;  %s2666_s5 = inlined_call_operand.vmem [shape: f32[1,128], index: 5, kind: input, shape index: {}]   ;;  %s2667_s6 = inlined_call_operand.<no memory space> [shape: f32[1,1], index: 6, kind: input, shape index: {}]   ;;  %s2668_s7 = inlined_call_operand.vmem [shape: f32[8,1], index: 7, kind: output, shape index: {}]  }
   0x1   :  { %v12_v0 = vstv %s2667_s6 }
   0x2   :  { %13 = vst [vmem:[#allocation3] sm:$0x1] %v12_v0 }
   0x3   :  { %14 = vsyncpa [#allocation5], 0 }
   0x4   :  { %15 = vsyncpa [#allocation7], 0  ;;  %s1973_s26 = smov [#allocation4]  }
   0x5   :  { %s25_s27 = sshll.u32 %s1973_s26, 4  ;;  %s26_s27 = int_to_ptr.vmem [resolvable:$true] %s25_s27 }
   0x6   :  { %s1937_s28 = scalar_lea.vmem %s26_s27, 4096  ;;  %p1942_p1 = scmp.lt.s32.totalorder %s26_s27, %s26_s27 }
   0x7   :  { %p1938_p0 = scmp.ne.s32.totalorder %s26_s27, %s1937_s28  ;;  %p1943_p2 = scmp.lt.s32.totalorder %s1937_s28, %s1937_s28 }
   0x9   :  { %p1944_p3 = por %p1943_p2, %p1942_p1 }
   0xb   :  { %p1945_p4 = pnand %p1944_p3, %p1938_p0 }
   0xd   :  { %1948 = shalt.err (!%p1945_p4)
}
   0xe   :  { %s1974_s29 = smov 256   ;;  %s1975_s30 = smov 16  }
   0xf   :  { %31 = dma.hbm_to_vmem [thread:$0]  %s2663_s2, 4096, %s26_s27, [#allocation5], %s1974_s29, %s1974_s29, %s1975_s30  }
  0x10   :  { %s1976_s6 = smov [#allocation6]  }
  0x11   :  { %s37_s10 = sshll.u32 %s1976_s6, 4  ;;  %s38_s10 = int_to_ptr.vmem [resolvable:$true] %s37_s10 }
  0x12   :  { %s1957_s11 = scalar_lea.vmem %s38_s10, 4096  ;;  %p1962_p6 = scmp.lt.s32.totalorder %s38_s10, %s38_s10 }
  0x13   :  { %p1958_p5 = scmp.ne.s32.totalorder %s38_s10, %s1957_s11  ;;  %p1963_p7 = scmp.lt.s32.totalorder %s1957_s11, %s1957_s11 }
  0x15   :  { %p1964_p8 = por %p1963_p7, %p1962_p6 }
  0x17   :  { %p1965_p9 = pnand %p1964_p8, %p1958_p5 }
  0x19   :  { %1968 = shalt.err (!%p1965_p9)
}
  0x1a   :  { %43 = dma.hbm_to_vmem [thread:$0]  %s2664_s3, 4096, %s38_s10, [#allocation7], %s1974_s29, %s1974_s29, %s1975_s30  }
  0x1b   :  { %1969 = dma.done.wait [#allocation5], 4096  }
  0x1c   :  { %1970 = vsyncadd [#allocation5], 4294963200 }
  0x1d   :  { %1971 = dma.done.wait [#allocation7], 4096  }
  0x1e   :  { %1972 = vsyncadd [#allocation7], 4294963200  ;;  %v2669_v1 = vmov 0   ;;  %v1717_v2 = vld [vmem:[#allocation4 + $0xe4] ss:$16 sps:$4 sm:$0xff]  }
  0x1f   :  { %335 = vmatprep.mubr.bf16.mxu0 %v2669_v1  ;;  %408 = vmatprep.mubr.bf16.mxu1 %v2669_v1  ;;  %v1719_v3 = vld [vmem:[#allocation4 + $0xec] ss:$16 sps:$4 sm:$0xff]   ;;  %v1721_v4 = vld [vmem:[#allocation4 + $0xe0] ss:$16 sps:$4 sm:$0xff]   ;;  %v1722_v5 = vld [vmem:[#allocation4 + $0xe8] ss:$16 sps:$4 sm:$0xff]  }
  0x20   :  { %1715 = vset.pattern.permute.xlu0 %v2669_v1  ;;  %1716 = vset.pattern.permute.xlu1 %v2669_v1  ;;  %v1723_v6 = vld [vmem:[#allocation4 + $0xc4] ss:$16 sps:$4 sm:$0xff]   ;;  %v1725_v7 = vld [vmem:[#allocation4 + $0xcc] ss:$16 sps:$4 sm:$0xff]   ;;  %v1727_v8 = vld [vmem:[#allocation4 + $0xc0] ss:$16 sps:$4 sm:$0xff]  }
  0x21   :  { %303 = vmatprep.subr.bf16.mxu0 %v1717_v2  ;;  %376 = vmatprep.subr.bf16.mxu1 %v1719_v3  ;;  %v1728_v9 = vld [vmem:[#allocation4 + $0xc8] ss:$16 sps:$4 sm:$0xff]   ;;  %v1729_v10 = vld [vmem:[#allocation4 + $0xa4] ss:$16 sps:$4 sm:$0xff]   ;;  %v1731_v11 = vld [vmem:[#allocation4 + $0xac] ss:$16 sps:$4 sm:$0xff]  }
  0x22   :  { %304 = vmatpush1.bf16.msra.mxu0 %v1721_v4  ;;  %377 = vmatpush1.bf16.msra.mxu1 %v1722_v5  ;;  %v1733_v12 = vld [vmem:[#allocation4 + $0xa0] ss:$16 sps:$4 sm:$0xff]   ;;  %v1734_v13 = vld [vmem:[#allocation4 + $0xa8] ss:$16 sps:$4 sm:$0xff]   ;;  %v1735_v14 = vld [vmem:[#allocation4 + $0x84] ss:$16 sps:$4 sm:$0xff]  }
  0x23   :  { %305 = vmatprep.subr.bf16.mxu0 %v1723_v6  ;;  %378 = vmatprep.subr.bf16.mxu1 %v1725_v7  ;;  %v1737_v15 = vld [vmem:[#allocation4 + $0x8c] ss:$16 sps:$4 sm:$0xff]   ;;  %v1739_v16 = vld [vmem:[#allocation4 + $0x80] ss:$16 sps:$4 sm:$0xff]   ;;  %v1740_v17 = vld [vmem:[#allocation4 + $0x88] ss:$16 sps:$4 sm:$0xff]  }
  0x24   :  { %v1741_v18 = vld [vmem:[#allocation4 + $0x64] ss:$16 sps:$4 sm:$0xff]   ;;  %v1743_v19 = vld [vmem:[#allocation4 + $0x6c] ss:$16 sps:$4 sm:$0xff]   ;;  %v1745_v20 = vld [vmem:[#allocation4 + $0x60] ss:$16 sps:$4 sm:$0xff]  }
  0x25   :  { %v1746_v21 = vld [vmem:[#allocation4 + $0x68] ss:$16 sps:$4 sm:$0xff]   ;;  %v1747_v22 = vld [vmem:[#allocation4 + $0x44] ss:$16 sps:$4 sm:$0xff]   ;;  %v1749_v23 = vld [vmem:[#allocation4 + $0x4c] ss:$16 sps:$4 sm:$0xff]  }
  0x26   :  { %306 = vmatpush1.bf16.msra.mxu0 %v1727_v8  ;;  %379 = vmatpush1.bf16.msra.mxu1 %v1728_v9  ;;  %v1751_v24 = vld [vmem:[#allocation4 + $0x40] ss:$16 sps:$4 sm:$0xff]   ;;  %v1752_v25 = vld [vmem:[#allocation4 + $0x48] ss:$16 sps:$4 sm:$0xff]   ;;  %v1753_v26 = vld [vmem:[#allocation4 + $0x24] ss:$16 sps:$4 sm:$0xff]  }
  0x27   :  { %307 = vmatprep.subr.bf16.mxu0 %v1729_v10  ;;  %380 = vmatprep.subr.bf16.mxu1 %v1731_v11  ;;  %v1755_v27 = vld [vmem:[#allocation4 + $0x2c] ss:$16 sps:$4 sm:$0xff]   ;;  %v1757_v28 = vld [vmem:[#allocation4 + $0x20] ss:$16 sps:$4 sm:$0xff]   ;;  %v1758_v29 = vld [vmem:[#allocation4 + $0x28] ss:$16 sps:$4 sm:$0xff]  }
  0x28   :  { %v1759_v30 = vld [vmem:[#allocation4 + $0x4] ss:$16 sps:$4 sm:$0xff]   ;;  %v1761_v31 = vld [vmem:[#allocation4 + $0xc] ss:$16 sps:$4 sm:$0xff]   ;;  %v1763_v32 = vld [vmem:[#allocation4] ss:$16 sps:$4 sm:$0xff]  }
  0x29   :  { %v1764_v33 = vld [vmem:[#allocation4 + $0x8] ss:$16 sps:$4 sm:$0xff]   ;;  %v2031_v34 = vld [vmem:[#allocation6 + $0xe4] ss:$16 sps:$4 sm:$0xff]   ;;  %v2033_v35 = vld [vmem:[#allocation6 + $0xec] ss:$16 sps:$4 sm:$0xff]  }
  0x2a   :  { %308 = vmatpush1.bf16.msra.mxu0 %v1733_v12  ;;  %381 = vmatpush1.bf16.msra.mxu1 %v1734_v13  ;;  %v1765_v36 = vld [vmem:[%s2661_s0] sm:$0xff]   ;;  %v2040_v38 = vld [vmem:[#allocation6 + $0xe8] ss:$16 sps:$4 sm:$0xff]   ;;  %v1791_v55 = vld [vmem:[%s2661_s0 + $0x10] sm:$0xff]   ;;  %v99_v12 = vlaneseq }
  0x2b   :  { %309 = vmatprep.subr.bf16.mxu0 %v1735_v14  ;;  %382 = vmatprep.subr.bf16.mxu1 %v1737_v15  ;;  %v2038_v37 = vld [vmem:[#allocation6 + $0xe0] ss:$16 sps:$4 sm:$0xff]   ;;  %v2044_v39 = vld [vmem:[#allocation6 + $0xc4] ss:$16 sps:$4 sm:$0xff]   ;;  %v2046_v40 = vld [vmem:[#allocation6 + $0xcc] ss:$16 sps:$4 sm:$0xff]  }
  0x2c   :  { %v2048_v41 = vld [vmem:[#allocation6 + $0xc0] ss:$16 sps:$4 sm:$0xff]   ;;  %v2052_v42 = vld [vmem:[#allocation6 + $0xc8] ss:$16 sps:$4 sm:$0xff]   ;;  %v2056_v43 = vld [vmem:[#allocation6 + $0xa4] ss:$16 sps:$4 sm:$0xff]  }
  0x2d   :  { %v2058_v44 = vld [vmem:[#allocation6 + $0xac] ss:$16 sps:$4 sm:$0xff]   ;;  %v2065_v46 = vld [vmem:[#allocation6 + $0xa0] ss:$16 sps:$4 sm:$0xff]   ;;  %v2067_v47 = vld [vmem:[#allocation6 + $0xa8] ss:$16 sps:$4 sm:$0xff]  }
  0x2e   :  { %310 = vmatpush1.bf16.msra.mxu0 %v1739_v16  ;;  %383 = vmatpush1.bf16.msra.mxu1 %v1740_v17  ;;  %v1778_v45 = vld [vmem:[%s2661_s0 + $0x8] sm:$0xff]   ;;  %v2077_v50 = vld [vmem:[#allocation6 + $0x80] ss:$16 sps:$4 sm:$0xff]   ;;  %v1804_v3 = vld [vmem:[%s2661_s0 + $0x18] sm:$0xff]   ;;  %v100_v13 = vshrl.u32 %v99_v12, 7 }
  0x2f   :  { %311 = vmatprep.subr.bf16.mxu0 %v1741_v18  ;;  %384 = vmatprep.subr.bf16.mxu1 %v1743_v19  ;;  %v2071_v48 = vld [vmem:[#allocation6 + $0x84] ss:$16 sps:$4 sm:$0xff]   ;;  %v2075_v49 = vld [vmem:[#allocation6 + $0x8c] ss:$16 sps:$4 sm:$0xff]   ;;  %v2079_v51 = vld [vmem:[#allocation6 + $0x88] ss:$16 sps:$4 sm:$0xff]  }
  0x30   :  { %v2083_v52 = vld [vmem:[#allocation6 + $0x64] ss:$16 sps:$4 sm:$0xff]   ;;  %v2087_v53 = vld [vmem:[#allocation6 + $0x6c] ss:$16 sps:$4 sm:$0xff]   ;;  %v2102_v56 = vld [vmem:[#allocation6 + $0x60] ss:$16 sps:$4 sm:$0xff]  }
  0x31   :  { %v2094_v54 = vld [vmem:[%s2662_s1] sm:$0xff]  ;;  %v2104_v57 = vld [vmem:[#allocation6 + $0x68] ss:$16 sps:$4 sm:$0xff]   ;;  %v109_v14 = vsub.s32 2, %v100_v13  ;;  %v101_v15 = vsub.s32 0, %v100_v13  ;;  %v113_v16 = vsub.s32 3, %v100_v13 }
  0x32   :  { %312 = vmatpush1.bf16.msra.mxu0 %v1745_v20  ;;  %385 = vmatpush1.bf16.msra.mxu1 %v1746_v21  ;;  %vm782_vm0 = vcmp.gt.s32.totalorder %v2094_v54, 0  ;;  %v2109_v59 = vld [vmem:[#allocation6 + $0x44] ss:$16 sps:$4 sm:$0xff]   ;;  %v2111_v60 = vld [vmem:[#allocation6 + $0x4c] ss:$16 sps:$4 sm:$0xff]   ;;  %vm899_vm1 = vcmp.gt.s32.totalorder %v2094_v54, 1 }
  0x33   :  { %313 = vmatprep.subr.bf16.mxu0 %v1747_v22  ;;  %386 = vmatprep.subr.bf16.mxu1 %v1749_v23  ;;  %v783_v58 = vsel %vm782_vm0, 1, %v2669_v1  ;;  %v2116_v61 = vld [vmem:[#allocation6 + $0x40] ss:$16 sps:$4 sm:$0xff]   ;;  %v2118_v62 = vld [vmem:[#allocation6 + $0x48] ss:$16 sps:$4 sm:$0xff]   ;;  %v900_v63 = vsel %vm899_vm1, 1, %v2669_v1 }
  0x34   :  { %785 = vperm.xlu0 %1715, %v783_v58   ;;  %v2123_v0 = vld [vmem:[#allocation6 + $0x24] ss:$16 sps:$4 sm:$0xff]   ;;  %v2125_v2 = vld [vmem:[#allocation6 + $0x2c] ss:$16 sps:$4 sm:$0xff]   ;;  %v2134_v4 = vld [vmem:[#allocation6 + $0x20] ss:$16 sps:$4 sm:$0xff]  }
  0x35   :  { %v2136_v5 = vld [vmem:[#allocation6 + $0x28] ss:$16 sps:$4 sm:$0xff]   ;;  %v2140_v6 = vld [vmem:[#allocation6 + $0x4] ss:$16 sps:$4 sm:$0xff]   ;;  %v2142_v7 = vld [vmem:[#allocation6 + $0xc] ss:$16 sps:$4 sm:$0xff]  }
  0x36   :  { %314 = vmatpush1.bf16.msra.mxu0 %v1751_v24  ;;  %387 = vmatpush1.bf16.msra.mxu1 %v1752_v25  ;;  %vm1250_vm2 = vcmp.gt.s32.totalorder %v2094_v54, 4  ;;  %v2147_v8 = vld [vmem:[#allocation6] ss:$16 sps:$4 sm:$0xff]   ;;  %v2149_v9 = vld [vmem:[#allocation6 + $0x8] ss:$16 sps:$4 sm:$0xff]   ;;  %vm1484_vm3 = vcmp.gt.s32.totalorder %v2094_v54, 6 }
  0x37   :  { %315 = vmatprep.subr.bf16.mxu0 %v1753_v26  ;;  %388 = vmatprep.subr.bf16.mxu1 %v1755_v27  ;;  %v1251_v10 = vsel %vm1250_vm2, 1, %v2669_v1  ;;  %v1485_v11 = vsel %vm1484_vm3, 1, %v2669_v1  ;;  %v97_v17 = vld [vmem:[%s2665_s4] sm:$0xf]  ;;  %v105_v21 = vsub.s32 1, %v100_v13  ;;  %vm1016_vm6 = vcmp.gt.s32.totalorder %v2094_v54, 2 }
  0x38   :  { %902 = vperm.xlu0 %1715, %v900_v63   ;;  %v2205_v20 = vrot.slane %v97_v17, %v109_v14  ;;  %v102_v24 = vrot.slane %v97_v17, %v101_v15  ;;  %v2211_v25 = vrot.slane %v97_v17, %v113_v16  ;;  %vm1133_vm7 = vcmp.gt.s32.totalorder %v2094_v54, 3 }
  0x39   :  { %vm1367_vm8 = vcmp.gt.s32.totalorder %v2094_v54, 5  ;;  %vm1601_vm9 = vcmp.gt.s32.totalorder %v2094_v54, 7  ;;  %vm1626_vm1 = vcmask 7168  }
  0x3a   :  { %316 = vmatpush1.bf16.msra.mxu0 %v1757_v28  ;;  %389 = vmatpush1.bf16.msra.mxu1 %v1758_v29  ;;  %v106_v28 = vrot.slane %v97_v17, %v105_v21 }
  0x3b   :  { %317 = vmatprep.subr.bf16.mxu0 %v1759_v30  ;;  %390 = vmatprep.subr.bf16.mxu1 %v1761_v31 }
  0x3c   :  { %1253 = vperm.xlu0 %1715, %v1251_v10  }
  0x3e   :  { %318 = vmatpush1.bf16.msra.mxu0 %v1763_v32  ;;  %391 = vmatpush1.bf16.msra.mxu1 %v1764_v33 }
  0x3f   :  { %678 = vmatprep.subr.bf16.mxu0 %v2031_v34  ;;  %719 = vmatprep.subr.bf16.mxu1 %v2033_v35 }
  0x40   :  { %1487 = vperm.xlu0 %1715, %v1485_v11  }
  0x41   :  { %336 = vmatmul.mubr.bf16.vlgmr.msra.gmra.mxu0 %v1765_v36  ;;  %409 = vmatmul.mubr.bf16.vlgmr.msra.gmra.mxu1 %v1765_v36 }
  0x42   :  { %679 = vmatpush1.bf16.msra.mxu0 %v2038_v37  ;;  %720 = vmatpush1.bf16.msra.mxu1 %v2040_v38 }
  0x43   :  { %680 = vmatprep.subr.bf16.mxu0 %v2044_v39  ;;  %721 = vmatprep.subr.bf16.mxu1 %v2046_v40 }
  0x44   :  { %345 = vmatprep.mubr.bf16.mxu0 %v2669_v1  ;;  %418 = vmatprep.mubr.bf16.mxu1 %v2669_v1 }
  0x46   :  { %681 = vmatpush1.bf16.msra.mxu0 %v2048_v41  ;;  %722 = vmatpush1.bf16.msra.mxu1 %v2052_v42 }
  0x47   :  { %682 = vmatprep.subr.bf16.mxu0 %v2056_v43  ;;  %723 = vmatprep.subr.bf16.mxu1 %v2058_v44 }
  0x49   :  { %346 = vmatmul.mubr.bf16.gmra.mxu0 %v1778_v45  ;;  %419 = vmatmul.mubr.bf16.gmra.mxu1 %v1778_v45 }
  0x4a   :  { %683 = vmatpush1.bf16.msra.mxu0 %v2065_v46  ;;  %724 = vmatpush1.bf16.msra.mxu1 %v2067_v47 }
  0x4b   :  { %684 = vmatprep.subr.bf16.mxu0 %v2071_v48  ;;  %725 = vmatprep.subr.bf16.mxu1 %v2075_v49 }
  0x4c   :  { %355 = vmatprep.mubr.bf16.mxu0 %v2669_v1  ;;  %428 = vmatprep.mubr.bf16.mxu1 %v2669_v1 }
  0x4e   :  { %685 = vmatpush1.bf16.msra.mxu0 %v2077_v50  ;;  %726 = vmatpush1.bf16.msra.mxu1 %v2079_v51 }
  0x4f   :  { %686 = vmatprep.subr.bf16.mxu0 %v2083_v52  ;;  %727 = vmatprep.subr.bf16.mxu1 %v2087_v53 }
  0x51   :  { %356 = vmatmul.mubr.bf16.gmra.mxu0 %v1791_v55  ;;  %429 = vmatmul.mubr.bf16.gmra.mxu1 %v1791_v55 }
  0x52   :  { %687 = vmatpush1.bf16.msra.mxu0 %v2102_v56  ;;  %728 = vmatpush1.bf16.msra.mxu1 %v2104_v57 }
  0x53   :  { %688 = vmatprep.subr.bf16.mxu0 %v2109_v59  ;;  %729 = vmatprep.subr.bf16.mxu1 %v2111_v60 }
  0x54   :  { %365 = vmatprep.mubr.bf16.mxu0 %v2669_v1  ;;  %438 = vmatprep.mubr.bf16.mxu1 %v2669_v1 }
  0x56   :  { %689 = vmatpush1.bf16.msra.mxu0 %v2116_v61  ;;  %730 = vmatpush1.bf16.msra.mxu1 %v2118_v62 }
  0x57   :  { %690 = vmatprep.subr.bf16.mxu0 %v2123_v0  ;;  %731 = vmatprep.subr.bf16.mxu1 %v2125_v2 }
  0x59   :  { %366 = vmatmul.mubr.bf16.gmra.mxu0 %v1804_v3  ;;  %439 = vmatmul.mubr.bf16.gmra.mxu1 %v1804_v3 }
  0x5a   :  { %691 = vmatpush1.bf16.msra.mxu0 %v2134_v4  ;;  %732 = vmatpush1.bf16.msra.mxu1 %v2136_v5 }
  0x5b   :  { %692 = vmatprep.subr.bf16.mxu0 %v2140_v6  ;;  %733 = vmatprep.subr.bf16.mxu1 %v2142_v7 }
  0x5c   :  { %710 = vmatprep.mubr.bf16.mxu0 %v2669_v1  ;;  %751 = vmatprep.mubr.bf16.mxu1 %v2669_v1 }
  0x5e   :  { %693 = vmatpush1.bf16.msra.mxu0 %v2147_v8  ;;  %734 = vmatpush1.bf16.msra.mxu1 %v2149_v9 }
  0x5f   :  { %795 = vmatprep.subr.bf16.mxu0 %v2031_v34  ;;  %836 = vmatprep.subr.bf16.mxu1 %v2033_v35 }
  0x61   :  { %711 = vmatmul.mubr.bf16.vlgmr.msra.gmra.mxu0 %v2669_v1  ;;  %752 = vmatmul.mubr.bf16.vlgmr.msra.gmra.mxu1 %v2669_v1 }
  0x62   :  { %796 = vmatpush1.bf16.msra.mxu0 %v2038_v37  ;;  %837 = vmatpush1.bf16.msra.mxu1 %v2040_v38 }
  0x63   :  { %797 = vmatprep.subr.bf16.mxu0 %v2044_v39  ;;  %838 = vmatprep.subr.bf16.mxu1 %v2046_v40 }
  0x64   :  { %827 = vmatprep.mubr.bf16.mxu0 %v2669_v1  ;;  %868 = vmatprep.mubr.bf16.mxu1 %v2669_v1 }
  0x66   :  { %798 = vmatpush1.bf16.msra.mxu0 %v2048_v41  ;;  %839 = vmatpush1.bf16.msra.mxu1 %v2052_v42 }
  0x67   :  { %799 = vmatprep.subr.bf16.mxu0 %v2056_v43  ;;  %840 = vmatprep.subr.bf16.mxu1 %v2058_v44 }
  0x6a   :  { %800 = vmatpush1.bf16.msra.mxu0 %v2065_v46  ;;  %841 = vmatpush1.bf16.msra.mxu1 %v2067_v47 }
  0x6b   :  { %801 = vmatprep.subr.bf16.mxu0 %v2071_v48  ;;  %842 = vmatprep.subr.bf16.mxu1 %v2075_v49 }
  0x6e   :  { %802 = vmatpush1.bf16.msra.mxu0 %v2077_v50  ;;  %843 = vmatpush1.bf16.msra.mxu1 %v2079_v51 }
  0x6f   :  { %803 = vmatprep.subr.bf16.mxu0 %v2083_v52  ;;  %844 = vmatprep.subr.bf16.mxu1 %v2087_v53 }
  0x72   :  { %804 = vmatpush1.bf16.msra.mxu0 %v2102_v56  ;;  %845 = vmatpush1.bf16.msra.mxu1 %v2104_v57 }
  0x73   :  { %805 = vmatprep.subr.bf16.mxu0 %v2109_v59  ;;  %846 = vmatprep.subr.bf16.mxu1 %v2111_v60 }
  0x76   :  { %806 = vmatpush1.bf16.msra.mxu0 %v2116_v61  ;;  %847 = vmatpush1.bf16.msra.mxu1 %v2118_v62 }
  0x77   :  { %807 = vmatprep.subr.bf16.mxu0 %v2123_v0  ;;  %848 = vmatprep.subr.bf16.mxu1 %v2125_v2 }
  0x7a   :  { %808 = vmatpush1.bf16.msra.mxu0 %v2134_v4  ;;  %849 = vmatpush1.bf16.msra.mxu1 %v2136_v5 }
  0x7b   :  { %809 = vmatprep.subr.bf16.mxu0 %v2140_v6  ;;  %850 = vmatprep.subr.bf16.mxu1 %v2142_v7 }
  0x7e   :  { %810 = vmatpush1.bf16.msra.mxu0 %v2147_v8  ;;  %851 = vmatpush1.bf16.msra.mxu1 %v2149_v9 }
  0x7f   :  { %912 = vmatprep.subr.bf16.mxu0 %v2031_v34  ;;  %953 = vmatprep.subr.bf16.mxu1 %v2033_v35 }
 0x101   :  { %v2201_v18 = vpop.f32.mrf.mxu0  ;;  %v2203_v19 = vpop.f32.mrf.mxu1 }
 0x103   :  { %v2207_v22 = vpop.f32.mrf.mxu0  ;;  %v2209_v23 = vpop.f32.mrf.mxu1 }
 0x105   :  { %v341_v26 = vpop.f32.mrf.mxu0  ;;  %v414_v27 = vpop.f32.mrf.mxu1 }
 0x106   :  { %v2213_v29 = vadd.f32 %v341_v26, %v102_v24  ;;  %v2216_v30 = vadd.f32 %v414_v27, %v2205_v20 }
 0x107   :  { %v343_v31 = vpop.f32.mrf.mxu0  ;;  %v416_v32 = vpop.f32.mrf.mxu1 }
 0x108   :  { %v2218_v33 = vadd.f32 %v343_v31, %v106_v28  ;;  %v2221_v36 = vadd.f32 %v416_v32, %v2211_v25 }
 0x109   :  { %v347_v45 = vpop.f32.mrf.mxu0  ;;  %v420_v55 = vpop.f32.mrf.mxu1 }
 0x10a   :  { %v2223_v58 = vadd.f32 %v347_v45, %v102_v24  ;;  %v2226_v63 = vadd.f32 %v420_v55, %v2205_v20 }
 0x10b   :  { %v349_v3 = vpop.f32.mrf.mxu0  ;;  %v422_v10 = vpop.f32.mrf.mxu1 }
 0x10c   :  { %2671 = vst [vmem:[#allocation10_spill] sm:$0xff] %v2226_v63  ;;  %v2228_v11 = vadd.f32 %v349_v3, %v106_v28  ;;  %v2231_v12 = vadd.f32 %v422_v10, %v2211_v25  ;;  %v413_v63 = vadd.f32 %v2209_v23, %v2211_v25 }
 0x10d   :  { %v351_v13 = vpop.f32.mrf.mxu0  ;;  %v424_v14 = vpop.f32.mrf.mxu1 }
 0x10e   :  { %v2233_v15 = vadd.f32 %v351_v13, %v102_v24  ;;  %v2236_v16 = vadd.f32 %v424_v14, %v2205_v20 }
 0x10f   :  { %v353_v17 = vpop.f32.mrf.mxu0  ;;  %v426_v21 = vpop.f32.mrf.mxu1 }
 0x110   :  { %2672 = vst [vmem:[#allocation11_spill] sm:$0xff] %v2233_v15  ;;  %2673 = vst [vmem:[#allocation12_spill] sm:$0xff] %v2236_v16  ;;  %v2238_v26 = vadd.f32 %v353_v17, %v106_v28  ;;  %v2241_v27 = vadd.f32 %v426_v21, %v2211_v25 }
 0x111   :  { %v357_v31 = vpop.f32.mrf.mxu0  ;;  %v430_v32 = vpop.f32.mrf.mxu1 }
 0x112   :  { %2674 = vst [vmem:[#allocation13_spill] sm:$0xff] %v2238_v26  ;;  %2675 = vst [vmem:[#allocation14_spill] sm:$0xff] %v2241_v27  ;;  %v2243_v45 = vadd.f32 %v357_v31, %v102_v24  ;;  %v2246_v55 = vadd.f32 %v430_v32, %v2205_v20 }
 0x113   :  { %v359_v3 = vpop.f32.mrf.mxu0  ;;  %v432_v10 = vpop.f32.mrf.mxu1 }
 0x114   :  { %2676 = vst [vmem:[#allocation15_spill] sm:$0xff] %v2243_v45  ;;  %2677 = vst [vmem:[#allocation16_spill] sm:$0xff] %v2246_v55  ;;  %v2248_v13 = vadd.f32 %v359_v3, %v106_v28  ;;  %v2251_v14 = vadd.f32 %v432_v10, %v2211_v25 }
 0x115   :  { %v361_v1 = vpop.f32.mrf.mxu0  ;;  %v434_v17 = vpop.f32.mrf.mxu1 }
 0x116   :  { %2678 = vst [vmem:[#allocation17_spill] sm:$0xff] %v2248_v13  ;;  %2679 = vst [vmem:[#allocation18_spill] sm:$0xff] %v2251_v14  ;;  %v2253_v16 = vadd.f32 %v361_v1, %v102_v24  ;;  %v2256_v21 = vadd.f32 %v434_v17, %v2205_v20 }
 0x117   :  { %v363_v27 = vpop.f32.mrf.mxu0  ;;  %v436_v31 = vpop.f32.mrf.mxu1 }
 0x118   :  { %2680 = vst [vmem:[#allocation19_spill] sm:$0xff] %v2253_v16  ;;  %2681 = vst [vmem:[#allocation20_spill] sm:$0xff] %v2256_v21  ;;  %v2258_v45 = vadd.f32 %v363_v27, %v106_v28  ;;  %v2261_v32 = vadd.f32 %v436_v31, %v2211_v25 }
 0x119   :  { %v367_v55 = vpop.f32.mrf.mxu0  ;;  %v440_v3 = vpop.f32.mrf.mxu1 }
 0x11a   :  { %2682 = vst [vmem:[#allocation21_spill] sm:$0xff] %v2258_v45  ;;  %2683 = vst [vmem:[#allocation22_spill] sm:$0xff] %v2261_v32  ;;  %v2263_v13 = vadd.f32 %v367_v55, %v102_v24  ;;  %v2266_v10 = vadd.f32 %v440_v3, %v2205_v20 }
 0x11b   :  { %v369_v14 = vpop.f32.mrf.mxu0  ;;  %v442_v1 = vpop.f32.mrf.mxu1 }
 0x11c   :  { %2684 = vst [vmem:[#allocation23_spill] sm:$0xff] %v2263_v13  ;;  %2685 = vst [vmem:[#allocation24_spill] sm:$0xff] %v2266_v10  ;;  %v2268_v16 = vadd.f32 %v369_v14, %v106_v28  ;;  %v2271_v17 = vadd.f32 %v442_v1, %v2211_v25  ;;  %v338_v13 = vadd.f32 %v2201_v18, %v102_v24 }
 0x11d   :  { %v371_v21 = vpop.f32.mrf.mxu0  ;;  %v444_v27 = vpop.f32.mrf.mxu1  ;;  %v340_v1 = vadd.f32 %v2207_v22, %v106_v28 }
 0x11e   :  { %2686 = vst [vmem:[#allocation25_spill] sm:$0xff] %v2268_v16  ;;  %2687 = vst [vmem:[#allocation26_spill] sm:$0xff] %v2271_v17  ;;  %v2273_v45 = vadd.f32 %v371_v21, %v102_v24  ;;  %v2276_v31 = vadd.f32 %v444_v27, %v2205_v20 }
 0x11f   :  { %v373_v32 = vpop.f32.mrf.mxu0  ;;  %v446_v55 = vpop.f32.mrf.mxu1 }
 0x120   :  { %2688 = vst [vmem:[#allocation27_spill] sm:$0xff] %v2273_v45  ;;  %2689 = vst [vmem:[#allocation28_spill] sm:$0xff] %v2276_v31  ;;  %v2279_v3 = vadd.f32 %v373_v32, %v106_v28  ;;  %v2282_v10 = vadd.f32 %v446_v55, %v2211_v25 }
 0x121   :  { %v712_v14 = vpop.f32.mrf.mxu0  ;;  %v753_v16 = vpop.f32.mrf.mxu1 }
 0x122   :  { %2690 = vst [vmem:[#allocation29_spill] sm:$0xff] %v2282_v10  ;;  %v760_v17 = vadd.f32 %v712_v14, %v338_v13  ;;  %v411_v10 = vadd.f32 %v2203_v19, %v2205_v20  ;;  %v2292_v19 = vpop.permute.xlu0 %785 }
 0x123   :  { %v714_v26 = vpop.f32.mrf.mxu0  ;;  %v755_v21 = vpop.f32.mrf.mxu1  ;;  %vm787_vm4 = vcmp.eq.s32.totalorder %v2292_v19, 1 }
 0x124   :  { %v764_v45 = vmul.f32 0.5, %v760_v17  ;;  %v761_v15 = vadd.f32 %v714_v26, %v340_v1  ;;  %v763_v55 = vadd.f32 %v755_v21, %v413_v63  ;;  %v762_v22 = vadd.f32 %v753_v16, %v411_v10  ;;  %vm1702_vm5 = vmpackc.low %vm787_vm4, %vm787_vm4 }
 0x125   :  { %v716_v27 = vpop.f32.mrf.mxu0  ;;  %v757_v31 = vpop.f32.mrf.mxu1 }
 0x126   :  { %1817 = vtanh.f32 %v764_v45  ;;  %v765_v18 = vmul.f32 0.5, %v761_v15  ;;  %v766_v28 = vmul.f32 0.5, %v762_v22 }
 0x127   :  { %v717_v24 = vpop.f32.mrf.mxu0  ;;  %v758_v32 = vpop.f32.mrf.mxu1 }
 0x128   :  { %1819 = vtanh.f32 %v765_v18  ;;  %v2691_v18 = vmov 0  }
 0x129   :  { %1821 = vtanh.f32 %v763_v55  ;;  %v1017_v24 = vsel %vm1016_vm6, 1, %v2691_v18  ;;  %v1134_v32 = vsel %vm1133_vm7, 1, %v2691_v18  ;;  %v1368_v55 = vsel %vm1367_vm8, 1, %v2691_v18 }
 0x12a   :  { %1823 = vtanh.f32 %v766_v28  ;;  %1019 = vperm.xlu1 %1716, %v1017_v24   ;;  %v1602_v22 = vsel %vm1601_vm9, 1, %v2691_v18 }
 0x12e   :  { %1136 = vperm.xlu1 %1716, %v1134_v32  }
 0x132   :  { %1370 = vperm.xlu1 %1716, %v1368_v55  }
 0x133   :  { %v1818_v13 = vpop.eup %1817 }
 0x134   :  { %v770_v17 = vmul.f32 0.5, %v1818_v13 }
 0x135   :  { %v1820_v26 = vpop.eup %1819 }
 0x136   :  { %v773_v14 = vadd.f32 0.5, %v770_v17  ;;  %v771_v31 = vmul.f32 0.5, %v1820_v26  ;;  %v1822_v23 = vpop.eup %1821  ;;  %1604 = vperm.xlu1 %1716, %v1602_v22  }
 0x137   :  { %v1824_v63 = vpop.eup %1823 }
 0x138   :  { %v774_v1 = vadd.f32 0.5, %v771_v31  ;;  %v778_v15 = vmul.f32 %v1822_v23, %v773_v14  ;;  %v772_v21 = vmul.f32 0.5, %v1824_v63 }
 0x13a   :  { %v777_v25 = vmul.f32 0.0, %v774_v1  ;;  %v775_v20 = vadd.f32 0.5, %v772_v21 }
 0x13c   :  { %v2289_v45 = vadd.f32 %v778_v15, %v777_v25 }
 0x13e   :  { %1825 = vtanh.f32 %v2289_v45 }
 0x14b   :  { %v1826_v16 = vpop.eup %1825 }
 0x14c   :  { %v2294_v10 = vmul.f32 %v1826_v16, %v775_v20 }
 0x14e   :  { %v1703_v27 = vpack.c.bf16 %v2294_v10, %v2294_v10 }
 0x150   :  { %1704 = vmatmul.mubr.msk.bf16.vlgmr.msra.gmra.mxu0 %vm1702_vm5, %v1703_v27  ;;  %1707 = vmatmul.mubr.msk.bf16.vlgmr.msra.gmra.mxu1 %vm1702_vm5, %v1703_v27 }
 0x151   :  { %913 = vmatpush1.bf16.msra.mxu0 %v2038_v37  ;;  %954 = vmatpush1.bf16.msra.mxu1 %v2040_v38 }
 0x152   :  { %914 = vmatprep.subr.bf16.mxu0 %v2044_v39  ;;  %955 = vmatprep.subr.bf16.mxu1 %v2046_v40 }
 0x153   :  { %944 = vmatprep.mubr.bf16.mxu0 %v2691_v18  ;;  %985 = vmatprep.mubr.bf16.mxu1 %v2691_v18 }
 0x155   :  { %915 = vmatpush1.bf16.msra.mxu0 %v2048_v41  ;;  %956 = vmatpush1.bf16.msra.mxu1 %v2052_v42 }
 0x156   :  { %916 = vmatprep.subr.bf16.mxu0 %v2056_v43  ;;  %957 = vmatprep.subr.bf16.mxu1 %v2058_v44 }
 0x159   :  { %917 = vmatpush1.bf16.msra.mxu0 %v2065_v46  ;;  %958 = vmatpush1.bf16.msra.mxu1 %v2067_v47 }
 0x15a   :  { %918 = vmatprep.subr.bf16.mxu0 %v2071_v48  ;;  %959 = vmatprep.subr.bf16.mxu1 %v2075_v49 }
 0x15d   :  { %919 = vmatpush1.bf16.msra.mxu0 %v2077_v50  ;;  %960 = vmatpush1.bf16.msra.mxu1 %v2079_v51 }
 0x15e   :  { %920 = vmatprep.subr.bf16.mxu0 %v2083_v52  ;;  %961 = vmatprep.subr.bf16.mxu1 %v2087_v53 }
 0x161   :  { %921 = vmatpush1.bf16.msra.mxu0 %v2102_v56  ;;  %962 = vmatpush1.bf16.msra.mxu1 %v2104_v57 }
 0x162   :  { %922 = vmatprep.subr.bf16.mxu0 %v2109_v59  ;;  %963 = vmatprep.subr.bf16.mxu1 %v2111_v60 }
 0x165   :  { %923 = vmatpush1.bf16.msra.mxu0 %v2116_v61  ;;  %964 = vmatpush1.bf16.msra.mxu1 %v2118_v62 }
 0x166   :  { %924 = vmatprep.subr.bf16.mxu0 %v2123_v0  ;;  %965 = vmatprep.subr.bf16.mxu1 %v2125_v2 }
 0x169   :  { %925 = vmatpush1.bf16.msra.mxu0 %v2134_v4  ;;  %966 = vmatpush1.bf16.msra.mxu1 %v2136_v5 }
 0x16a   :  { %926 = vmatprep.subr.bf16.mxu0 %v2140_v6  ;;  %967 = vmatprep.subr.bf16.mxu1 %v2142_v7 }
 0x16d   :  { %927 = vmatpush1.bf16.msra.mxu0 %v2147_v8  ;;  %968 = vmatpush1.bf16.msra.mxu1 %v2149_v9 }
 0x16e   :  { %1029 = vmatprep.subr.bf16.mxu0 %v2031_v34  ;;  %1070 = vmatprep.subr.bf16.mxu1 %v2033_v35 }
 0x210   :  { %v829_v28 = vpop.f32.mrf.mxu0  ;;  %v870_v13 = vpop.f32.mrf.mxu1 }
 0x211   :  { %v877_v17 = vadd.f32 %v829_v28, %v2213_v29  ;;  %v879_v20 = vadd.f32 %v870_v13, %v2216_v30 }
 0x212   :  { %v831_v26 = vpop.f32.mrf.mxu0  ;;  %v872_v14 = vpop.f32.mrf.mxu1 }
 0x213   :  { %v881_v31 = vmul.f32 0.5, %v877_v17  ;;  %v878_v1 = vadd.f32 %v831_v26, %v2218_v33  ;;  %v880_v63 = vadd.f32 %v872_v14, %v2221_v36  ;;  %v883_v16 = vmul.f32 0.5, %v879_v20  ;;  %v903_v26 = vpop.permute.xlu0 %902 }
 0x214   :  { %v833_v23 = vpop.f32.mrf.mxu0  ;;  %v874_v25 = vpop.f32.mrf.mxu1  ;;  %v788_v36 = vsel %vm787_vm4, %v2289_v45, 0.0  ;;  %vm904_vm10 = vcmp.eq.s32.totalorder %v903_v26, 1 }
 0x215   :  { %1827 = vtanh.f32 %v881_v31  ;;  %v882_v15 = vmul.f32 0.5, %v878_v1 }
 0x216   :  { %v834_v54 = vpop.f32.mrf.mxu0  ;;  %v875_v21 = vpop.f32.mrf.mxu1 }
 0x217   :  { %1829 = vtanh.f32 %v882_v15  ;;  %v789_v15 = vsel %vm787_vm4, %v2294_v10, 0.0 }
 0x218   :  { %1831 = vtanh.f32 %v880_v63 }
 0x219   :  { %1833 = vtanh.f32 %v883_v16 }
 0x222   :  { %v1828_v27 = vpop.eup %1827 }
 0x223   :  { %v887_v29 = vmul.f32 0.5, %v1828_v27 }
 0x224   :  { %v1830_v24 = vpop.eup %1829 }
 0x225   :  { %v890_v32 = vadd.f32 0.5, %v887_v29  ;;  %v888_v55 = vmul.f32 0.5, %v1830_v24  ;;  %v1832_v33 = vpop.eup %1831 }
 0x226   :  { %v1834_v13 = vpop.eup %1833 }
 0x227   :  { %v891_v22 = vadd.f32 0.5, %v888_v55  ;;  %v895_v28 = vmul.f32 %v1832_v33, %v890_v32  ;;  %v889_v31 = vmul.f32 0.5, %v1834_v13 }
 0x229   :  { %v894_v17 = vmul.f32 %v891_v22, %v788_v36  ;;  %v892_v1 = vadd.f32 0.5, %v889_v31 }
 0x22b   :  { %v896_v14 = vadd.f32 %v895_v28, %v894_v17  ;;  %v2692_v28 = vld [vmem:[#allocation10_spill] sm:$0xff] }
 0x22d   :  { %1835 = vtanh.f32 %v896_v14  ;;  %v2351_v30 = vsel %vm904_vm10, %v896_v14, %v788_v36 }
 0x23a   :  { %v1836_v23 = vpop.eup %1835 }
 0x23b   :  { %v898_v25 = vmul.f32 %v1836_v23, %v892_v1  ;;  %v1020_v23 = vpop.permute.xlu1 %1019 }
 0x23c   :  { %vm1021_vm11 = vcmp.eq.s32.totalorder %v1020_v23, 1 }
 0x23d   :  { %v2356_v63 = vsel %vm904_vm10, %v898_v25, %v789_v15 }
 0x23e   :  { %v911_v45 = vpack.c.bf16 %v2356_v63, %v2356_v63 }
 0x240   :  { %945 = vmatmul.mubr.bf16.vlgmr.msra.gmra.mxu0 %v911_v45  ;;  %986 = vmatmul.mubr.bf16.vlgmr.msra.gmra.mxu1 %v911_v45 }
 0x241   :  { %1030 = vmatpush1.bf16.msra.mxu0 %v2038_v37  ;;  %1071 = vmatpush1.bf16.msra.mxu1 %v2040_v38 }
 0x242   :  { %1031 = vmatprep.subr.bf16.mxu0 %v2044_v39  ;;  %1072 = vmatprep.subr.bf16.mxu1 %v2046_v40 }
 0x243   :  { %1061 = vmatprep.mubr.bf16.mxu0 %v2691_v18  ;;  %1102 = vmatprep.mubr.bf16.mxu1 %v2691_v18 }
 0x245   :  { %1032 = vmatpush1.bf16.msra.mxu0 %v2048_v41  ;;  %1073 = vmatpush1.bf16.msra.mxu1 %v2052_v42 }
 0x246   :  { %1033 = vmatprep.subr.bf16.mxu0 %v2056_v43  ;;  %1074 = vmatprep.subr.bf16.mxu1 %v2058_v44 }
 0x249   :  { %1034 = vmatpush1.bf16.msra.mxu0 %v2065_v46  ;;  %1075 = vmatpush1.bf16.msra.mxu1 %v2067_v47 }
 0x24a   :  { %1035 = vmatprep.subr.bf16.mxu0 %v2071_v48  ;;  %1076 = vmatprep.subr.bf16.mxu1 %v2075_v49 }
 0x24d   :  { %1036 = vmatpush1.bf16.msra.mxu0 %v2077_v50  ;;  %1077 = vmatpush1.bf16.msra.mxu1 %v2079_v51 }
 0x24e   :  { %1037 = vmatprep.subr.bf16.mxu0 %v2083_v52  ;;  %1078 = vmatprep.subr.bf16.mxu1 %v2087_v53 }
 0x251   :  { %1038 = vmatpush1.bf16.msra.mxu0 %v2102_v56  ;;  %1079 = vmatpush1.bf16.msra.mxu1 %v2104_v57 }
 0x252   :  { %1039 = vmatprep.subr.bf16.mxu0 %v2109_v59  ;;  %1080 = vmatprep.subr.bf16.mxu1 %v2111_v60 }
 0x255   :  { %1040 = vmatpush1.bf16.msra.mxu0 %v2116_v61  ;;  %1081 = vmatpush1.bf16.msra.mxu1 %v2118_v62 }
 0x256   :  { %1041 = vmatprep.subr.bf16.mxu0 %v2123_v0  ;;  %1082 = vmatprep.subr.bf16.mxu1 %v2125_v2 }
 0x259   :  { %1042 = vmatpush1.bf16.msra.mxu0 %v2134_v4  ;;  %1083 = vmatpush1.bf16.msra.mxu1 %v2136_v5 }
 0x25a   :  { %1043 = vmatprep.subr.bf16.mxu0 %v2140_v6  ;;  %1084 = vmatprep.subr.bf16.mxu1 %v2142_v7 }
 0x25d   :  { %1044 = vmatpush1.bf16.msra.mxu0 %v2147_v8  ;;  %1085 = vmatpush1.bf16.msra.mxu1 %v2149_v9 }
 0x25e   :  { %1146 = vmatprep.subr.bf16.mxu0 %v2031_v34  ;;  %1187 = vmatprep.subr.bf16.mxu1 %v2033_v35 }
 0x300   :  { %v946_v19 = vpop.f32.mrf.mxu0  ;;  %v987_v10 = vpop.f32.mrf.mxu1 }
 0x301   :  { %v994_v54 = vadd.f32 %v946_v19, %v2223_v58  ;;  %v996_v36 = vadd.f32 %v987_v10, %v2692_v28 }
 0x302   :  { %v948_v21 = vpop.f32.mrf.mxu0  ;;  %v989_v20 = vpop.f32.mrf.mxu1 }
 0x303   :  { %v998_v16 = vmul.f32 0.5, %v994_v54  ;;  %v995_v27 = vadd.f32 %v948_v21, %v2228_v11  ;;  %v997_v55 = vadd.f32 %v989_v20, %v2231_v12  ;;  %v1000_v17 = vmul.f32 0.5, %v996_v36 }
 0x304   :  { %v950_v29 = vpop.f32.mrf.mxu0  ;;  %v991_v24 = vpop.f32.mrf.mxu1 }
 0x305   :  { %1837 = vtanh.f32 %v998_v16  ;;  %v999_v32 = vmul.f32 0.5, %v995_v27 }
 0x306   :  { %v951_v33 = vpop.f32.mrf.mxu0  ;;  %v992_v22 = vpop.f32.mrf.mxu1 }
 0x307   :  { %1839 = vtanh.f32 %v999_v32 }
 0x308   :  { %1841 = vtanh.f32 %v997_v55  ;;  %v2694_v55 = vld [vmem:[#allocation13_spill] sm:$0xff] }
 0x309   :  { %1843 = vtanh.f32 %v1000_v17  ;;  %v2695_v17 = vld [vmem:[#allocation14_spill] sm:$0xff] }
 0x312   :  { %v1838_v26 = vpop.eup %1837 }
 0x313   :  { %v1004_v58 = vmul.f32 0.5, %v1838_v26 }
 0x314   :  { %v1840_v14 = vpop.eup %1839 }
 0x315   :  { %v1007_v13 = vadd.f32 0.5, %v1004_v58  ;;  %v1005_v31 = vmul.f32 0.5, %v1840_v14  ;;  %v1842_v11 = vpop.eup %1841 }
 0x316   :  { %v1844_v19 = vpop.eup %1843 }
 0x317   :  { %v1008_v1 = vadd.f32 0.5, %v1005_v31  ;;  %v1012_v25 = vmul.f32 %v1842_v11, %v1007_v13  ;;  %v1006_v10 = vmul.f32 0.5, %v1844_v19 }
 0x319   :  { %v1011_v15 = vmul.f32 %v1008_v1, %v2351_v30  ;;  %v1009_v54 = vadd.f32 0.5, %v1006_v10 }
 0x31b   :  { %v1013_v12 = vadd.f32 %v1012_v25, %v1011_v15 }
 0x31d   :  { %1845 = vtanh.f32 %v1013_v12  ;;  %v2400_v45 = vsel %vm1021_vm11, %v1013_v12, %v2351_v30  ;;  %v2693_v30 = vld [vmem:[#allocation11_spill] sm:$0xff] }
 0x32a   :  { %v1846_v21 = vpop.eup %1845 }
 0x32b   :  { %v1015_v20 = vmul.f32 %v1846_v21, %v1009_v54  ;;  %v1137_v54 = vpop.permute.xlu1 %1136 }
 0x32c   :  { %vm1138_vm12 = vcmp.eq.s32.totalorder %v1137_v54, 1  ;;  %v2543_v54 = vld [vmem:[#allocation6 + $0x80] ss:$16 sps:$4 sm:$0xff]  }
 0x32d   :  { %v2403_v16 = vsel %vm1021_vm11, %v1015_v20, %v2356_v63 }
 0x32e   :  { %v1028_v27 = vpack.c.bf16 %v2403_v16, %v2403_v16 }
 0x330   :  { %1062 = vmatmul.mubr.bf16.vlgmr.msra.gmra.mxu0 %v1028_v27  ;;  %1103 = vmatmul.mubr.bf16.vlgmr.msra.gmra.mxu1 %v1028_v27 }
 0x331   :  { %1147 = vmatpush1.bf16.msra.mxu0 %v2038_v37  ;;  %1188 = vmatpush1.bf16.msra.mxu1 %v2040_v38 }
 0x332   :  { %1148 = vmatprep.subr.bf16.mxu0 %v2044_v39  ;;  %1189 = vmatprep.subr.bf16.mxu1 %v2046_v40 }
 0x333   :  { %1178 = vmatprep.mubr.bf16.mxu0 %v2691_v18  ;;  %1219 = vmatprep.mubr.bf16.mxu1 %v2691_v18 }
 0x335   :  { %1149 = vmatpush1.bf16.msra.mxu0 %v2048_v41  ;;  %1190 = vmatpush1.bf16.msra.mxu1 %v2052_v42 }
 0x336   :  { %1150 = vmatprep.subr.bf16.mxu0 %v2056_v43  ;;  %1191 = vmatprep.subr.bf16.mxu1 %v2058_v44 }
 0x339   :  { %1151 = vmatpush1.bf16.msra.mxu0 %v2065_v46  ;;  %1192 = vmatpush1.bf16.msra.mxu1 %v2067_v47 }
 0x33a   :  { %1152 = vmatprep.subr.bf16.mxu0 %v2071_v48  ;;  %1193 = vmatprep.subr.bf16.mxu1 %v2075_v49 }
 0x33d   :  { %1153 = vmatpush1.bf16.msra.mxu0 %v2077_v50  ;;  %1194 = vmatpush1.bf16.msra.mxu1 %v2079_v51 }
 0x33e   :  { %1154 = vmatprep.subr.bf16.mxu0 %v2083_v52  ;;  %1195 = vmatprep.subr.bf16.mxu1 %v2087_v53 }
 0x341   :  { %1155 = vmatpush1.bf16.msra.mxu0 %v2102_v56  ;;  %1196 = vmatpush1.bf16.msra.mxu1 %v2104_v57 }
 0x342   :  { %1156 = vmatprep.subr.bf16.mxu0 %v2109_v59  ;;  %1197 = vmatprep.subr.bf16.mxu1 %v2111_v60 }
 0x345   :  { %1157 = vmatpush1.bf16.msra.mxu0 %v2116_v61  ;;  %1198 = vmatpush1.bf16.msra.mxu1 %v2118_v62 }
 0x346   :  { %1158 = vmatprep.subr.bf16.mxu0 %v2123_v0  ;;  %1199 = vmatprep.subr.bf16.mxu1 %v2125_v2 }
 0x349   :  { %1159 = vmatpush1.bf16.msra.mxu0 %v2134_v4  ;;  %1200 = vmatpush1.bf16.msra.mxu1 %v2136_v5 }
 0x34a   :  { %1160 = vmatprep.subr.bf16.mxu0 %v2140_v6  ;;  %1201 = vmatprep.subr.bf16.mxu1 %v2142_v7 }
 0x34d   :  { %1161 = vmatpush1.bf16.msra.mxu0 %v2147_v8  ;;  %1202 = vmatpush1.bf16.msra.mxu1 %v2149_v9 }
 0x34e   :  { %1263 = vmatprep.subr.bf16.mxu0 %v2031_v34  ;;  %1304 = vmatprep.subr.bf16.mxu1 %v2033_v35  ;;  %v2696_v34 = vld [vmem:[#allocation12_spill] sm:$0xff] }
 0x3f0   :  { %v1063_v37 = vpop.f32.mrf.mxu0  ;;  %v1104_v38 = vpop.f32.mrf.mxu1 }
 0x3f1   :  { %v1111_v63 = vadd.f32 %v1063_v37, %v2693_v30  ;;  %v1113_v35 = vadd.f32 %v1104_v38, %v2696_v34 }
 0x3f2   :  { %v1065_v29 = vpop.f32.mrf.mxu0  ;;  %v1106_v24 = vpop.f32.mrf.mxu1 }
 0x3f3   :  { %v1115_v32 = vmul.f32 0.5, %v1111_v63  ;;  %v1112_v33 = vadd.f32 %v1065_v29, %v2694_v55  ;;  %v1114_v26 = vadd.f32 %v1106_v24, %v2695_v17  ;;  %v1117_v13 = vmul.f32 0.5, %v1113_v35  ;;  %v2457_v55 = vld [vmem:[#allocation6 + $0xe8] ss:$16 sps:$4 sm:$0xff]  }
 0x3f4   :  { %v1067_v22 = vpop.f32.mrf.mxu0  ;;  %v1108_v28 = vpop.f32.mrf.mxu1 }
 0x3f5   :  { %1847 = vtanh.f32 %v1115_v32  ;;  %v1116_v36 = vmul.f32 0.5, %v1112_v33  ;;  %v2454_v32 = vld [vmem:[#allocation6 + $0xe0] ss:$16 sps:$4 sm:$0xff]   ;;  %v1254_v33 = vpop.permute.xlu0 %1253 }
 0x3f6   :  { %v1068_v58 = vpop.f32.mrf.mxu0  ;;  %v1109_v14 = vpop.f32.mrf.mxu1  ;;  %vm1255_vm13 = vcmp.eq.s32.totalorder %v1254_v33, 1 }
 0x3f7   :  { %1849 = vtanh.f32 %v1116_v36 }
 0x3f8   :  { %1851 = vtanh.f32 %v1114_v26 }
 0x3f9   :  { %1853 = vtanh.f32 %v1117_v13  ;;  %v2511_v13 = vld [vmem:[#allocation6 + $0xc4] ss:$16 sps:$4 sm:$0xff]  }
 0x402   :  { %v1848_v31 = vpop.eup %1847 }
 0x403   :  { %v1121_v11 = vmul.f32 0.5, %v1848_v31  ;;  %v2514_v31 = vld [vmem:[#allocation6 + $0xcc] ss:$16 sps:$4 sm:$0xff]  }
 0x404   :  { %v1850_v1 = vpop.eup %1849 }
 0x405   :  { %v1124_v23 = vadd.f32 0.5, %v1121_v11  ;;  %v1122_v25 = vmul.f32 0.5, %v1850_v1  ;;  %v1852_v15 = vpop.eup %1851  ;;  %v2519_v11 = vld [vmem:[#allocation6 + $0xc0] ss:$16 sps:$4 sm:$0xff]   ;;  %v2522_v1 = vld [vmem:[#allocation6 + $0xc8] ss:$16 sps:$4 sm:$0xff]  }
 0x406   :  { %v1854_v27 = vpop.eup %1853 }
 0x407   :  { %v1125_v12 = vadd.f32 0.5, %v1122_v25  ;;  %v1129_v19 = vmul.f32 %v1852_v15, %v1124_v23  ;;  %v1123_v37 = vmul.f32 0.5, %v1854_v27  ;;  %v2525_v23 = vld [vmem:[#allocation6 + $0xa4] ss:$16 sps:$4 sm:$0xff]   ;;  %v2528_v25 = vld [vmem:[#allocation6 + $0xac] ss:$16 sps:$4 sm:$0xff]  }
 0x408   :  { %v2531_v15 = vld [vmem:[#allocation6 + $0xa0] ss:$16 sps:$4 sm:$0xff]   ;;  %v2552_v27 = vld [vmem:[#allocation6 + $0x6c] ss:$16 sps:$4 sm:$0xff]  }
 0x409   :  { %v1128_v10 = vmul.f32 %v1125_v12, %v2400_v45  ;;  %v1126_v38 = vadd.f32 0.5, %v1123_v37  ;;  %v2534_v12 = vld [vmem:[#allocation6 + $0xa8] ss:$16 sps:$4 sm:$0xff]   ;;  %v2555_v37 = vld [vmem:[#allocation6 + $0x60] ss:$16 sps:$4 sm:$0xff]  }
 0x40b   :  { %v1130_v21 = vadd.f32 %v1129_v19, %v1128_v10  ;;  %v2537_v19 = vld [vmem:[#allocation6 + $0x84] ss:$16 sps:$4 sm:$0xff]   ;;  %v2540_v10 = vld [vmem:[#allocation6 + $0x8c] ss:$16 sps:$4 sm:$0xff]  }
 0x40d   :  { %1855 = vtanh.f32 %v1130_v21  ;;  %v2447_v20 = vsel %vm1138_vm12, %v1130_v21, %v2400_v45  ;;  %v2546_v21 = vld [vmem:[#allocation6 + $0x88] ss:$16 sps:$4 sm:$0xff]  }
 0x41a   :  { %v1856_v30 = vpop.eup %1855 }
 0x41b   :  { %v1132_v63 = vmul.f32 %v1856_v30, %v1126_v38  ;;  %v2558_v38 = vld [vmem:[#allocation6 + $0x68] ss:$16 sps:$4 sm:$0xff]   ;;  %v2561_v30 = vld [vmem:[#allocation6 + $0x44] ss:$16 sps:$4 sm:$0xff]  }
 0x41d   :  { %v2450_v29 = vsel %vm1138_vm12, %v1132_v63, %v2403_v16  ;;  %v2564_v63 = vld [vmem:[#allocation6 + $0x4c] ss:$16 sps:$4 sm:$0xff]  }
 0x41e   :  { %v1145_v24 = vpack.c.bf16 %v2450_v29, %v2450_v29 }
 0x420   :  { %1179 = vmatmul.mubr.bf16.vlgmr.msra.gmra.mxu0 %v1145_v24  ;;  %1220 = vmatmul.mubr.bf16.vlgmr.msra.gmra.mxu1 %v1145_v24  ;;  %v2570_v24 = vld [vmem:[#allocation6 + $0x48] ss:$16 sps:$4 sm:$0xff]  }
 0x421   :  { %1264 = vmatpush1.bf16.msra.mxu0 %v2454_v32  ;;  %1305 = vmatpush1.bf16.msra.mxu1 %v2457_v55 }
 0x422   :  { %1265 = vmatprep.subr.bf16.mxu0 %v2044_v39  ;;  %1306 = vmatprep.subr.bf16.mxu1 %v2046_v40  ;;  %v2490_v39 = vld [vmem:[#allocation6 + $0xe4] ss:$16 sps:$4 sm:$0xff]   ;;  %v2493_v40 = vld [vmem:[#allocation6 + $0xec] ss:$16 sps:$4 sm:$0xff]  }
 0x423   :  { %1295 = vmatprep.mubr.bf16.mxu0 %v2691_v18  ;;  %1336 = vmatprep.mubr.bf16.mxu1 %v2691_v18 }
 0x425   :  { %1266 = vmatpush1.bf16.msra.mxu0 %v2048_v41  ;;  %1307 = vmatpush1.bf16.msra.mxu1 %v2052_v42 }
 0x426   :  { %1267 = vmatprep.subr.bf16.mxu0 %v2056_v43  ;;  %1308 = vmatprep.subr.bf16.mxu1 %v2058_v44  ;;  %v2697_v43 = vld [vmem:[#allocation15_spill] sm:$0xff] }
 0x429   :  { %1268 = vmatpush1.bf16.msra.mxu0 %v2065_v46  ;;  %1309 = vmatpush1.bf16.msra.mxu1 %v2067_v47 }
 0x42a   :  { %1269 = vmatprep.subr.bf16.mxu0 %v2071_v48  ;;  %1310 = vmatprep.subr.bf16.mxu1 %v2075_v49  ;;  %v2698_v49 = vld [vmem:[#allocation17_spill] sm:$0xff] }
 0x42d   :  { %1270 = vmatpush1.bf16.msra.mxu0 %v2077_v50  ;;  %1311 = vmatpush1.bf16.msra.mxu1 %v2079_v51 }
 0x42e   :  { %1271 = vmatprep.subr.bf16.mxu0 %v2083_v52  ;;  %1312 = vmatprep.subr.bf16.mxu1 %v2087_v53 }
 0x431   :  { %1272 = vmatpush1.bf16.msra.mxu0 %v2102_v56  ;;  %1313 = vmatpush1.bf16.msra.mxu1 %v2104_v57  ;;  %v2699_v56 = vld [vmem:[#allocation18_spill] sm:$0xff] }
 0x432   :  { %1273 = vmatprep.subr.bf16.mxu0 %v2109_v59  ;;  %1314 = vmatprep.subr.bf16.mxu1 %v2111_v60 }
 0x435   :  { %1274 = vmatpush1.bf16.msra.mxu0 %v2116_v61  ;;  %1315 = vmatpush1.bf16.msra.mxu1 %v2118_v62  ;;  %v2700_v61 = vld [vmem:[#allocation16_spill] sm:$0xff] }
 0x436   :  { %1275 = vmatprep.subr.bf16.mxu0 %v2123_v0  ;;  %1316 = vmatprep.subr.bf16.mxu1 %v2125_v2 }
 0x439   :  { %1276 = vmatpush1.bf16.msra.mxu0 %v2134_v4  ;;  %1317 = vmatpush1.bf16.msra.mxu1 %v2136_v5 }
 0x43a   :  { %1277 = vmatprep.subr.bf16.mxu0 %v2140_v6  ;;  %1318 = vmatprep.subr.bf16.mxu1 %v2142_v7 }
 0x43d   :  { %1278 = vmatpush1.bf16.msra.mxu0 %v2147_v8  ;;  %1319 = vmatpush1.bf16.msra.mxu1 %v2149_v9 }
 0x43e   :  { %1380 = vmatprep.subr.bf16.mxu0 %v2490_v39  ;;  %1421 = vmatprep.subr.bf16.mxu1 %v2493_v40 }
 0x4e0   :  { %v1180_v41 = vpop.f32.mrf.mxu0  ;;  %v1221_v42 = vpop.f32.mrf.mxu1 }
 0x4e1   :  { %v1228_v44 = vadd.f32 %v1180_v41, %v2697_v43  ;;  %v1230_v62 = vadd.f32 %v1221_v42, %v2700_v61  ;;  %v2573_v41 = vld [vmem:[#allocation6 + $0x24] ss:$16 sps:$4 sm:$0xff]   ;;  %v2576_v42 = vld [vmem:[#allocation6 + $0x2c] ss:$16 sps:$4 sm:$0xff]   ;;  %v2579_v43 = vld [vmem:[#allocation6 + $0x20] ss:$16 sps:$4 sm:$0xff]  }
 0x4e2   :  { %v1182_v46 = vpop.f32.mrf.mxu0  ;;  %v1223_v47 = vpop.f32.mrf.mxu1 }
 0x4e3   :  { %v1232_v48 = vmul.f32 0.5, %v1228_v44  ;;  %v1229_v50 = vadd.f32 %v1182_v46, %v2698_v49  ;;  %v1231_v57 = vadd.f32 %v1223_v47, %v2699_v56  ;;  %v1234_v0 = vmul.f32 0.5, %v1230_v62  ;;  %v2582_v44 = vld [vmem:[#allocation6 + $0x28] ss:$16 sps:$4 sm:$0xff]   ;;  %v2585_v46 = vld [vmem:[#allocation6 + $0x4] ss:$16 sps:$4 sm:$0xff]  }
 0x4e4   :  { %v1184_v51 = vpop.f32.mrf.mxu0  ;;  %v1225_v52 = vpop.f32.mrf.mxu1  ;;  %v2588_v47 = vld [vmem:[#allocation6 + $0xc] ss:$16 sps:$4 sm:$0xff]   ;;  %v2594_v49 = vld [vmem:[#allocation6 + $0x8] ss:$16 sps:$4 sm:$0xff]  }
 0x4e5   :  { %1857 = vtanh.f32 %v1232_v48  ;;  %v1233_v53 = vmul.f32 0.5, %v1229_v50  ;;  %v2591_v48 = vld [vmem:[#allocation6] ss:$16 sps:$4 sm:$0xff]   ;;  %v2701_v52 = vld [vmem:[#allocation19_spill] sm:$0xff] }
 0x4e6   :  { %v1185_v59 = vpop.f32.mrf.mxu0  ;;  %v1226_v60 = vpop.f32.mrf.mxu1 }
 0x4e7   :  { %1859 = vtanh.f32 %v1233_v53  ;;  %v2702_v60 = vld [vmem:[#allocation21_spill] sm:$0xff] }
 0x4e8   :  { %1861 = vtanh.f32 %v1231_v57 }
 0x4e9   :  { %1863 = vtanh.f32 %v1234_v0 }
 0x4f2   :  { %v1858_v2 = vpop.eup %1857 }
 0x4f3   :  { %v1238_v4 = vmul.f32 0.5, %v1858_v2 }
 0x4f4   :  { %v1860_v5 = vpop.eup %1859 }
 0x4f5   :  { %v1241_v6 = vadd.f32 0.5, %v1238_v4  ;;  %v1239_v7 = vmul.f32 0.5, %v1860_v5  ;;  %v1862_v8 = vpop.eup %1861  ;;  %v2703_v4 = vld [vmem:[#allocation22_spill] sm:$0xff] }
 0x4f6   :  { %v1864_v36 = vpop.eup %1863 }
 0x4f7   :  { %v1242_v9 = vadd.f32 0.5, %v1239_v7  ;;  %v1246_v45 = vmul.f32 %v1862_v8, %v1241_v6  ;;  %v1240_v17 = vmul.f32 0.5, %v1864_v36 }
 0x4f9   :  { %v1245_v16 = vmul.f32 %v1242_v9, %v2447_v20  ;;  %v1243_v26 = vadd.f32 0.5, %v1240_v17 }
 0x4fb   :  { %v1247_v22 = vadd.f32 %v1246_v45, %v1245_v16 }
 0x4fd   :  { %1865 = vtanh.f32 %v1247_v22  ;;  %v2502_v28 = vsel %vm1255_vm13, %v1247_v22, %v2447_v20  ;;  %v2549_v20 = vld [vmem:[#allocation6 + $0x64] ss:$16 sps:$4 sm:$0xff]  }
 0x50a   :  { %v1866_v58 = vpop.eup %1865 }
 0x50b   :  { %v1249_v14 = vmul.f32 %v1866_v58, %v1243_v26 }
 0x50d   :  { %v2505_v34 = vsel %vm1255_vm13, %v1249_v14, %v2450_v29  ;;  %v2567_v29 = vld [vmem:[#allocation6 + $0x40] ss:$16 sps:$4 sm:$0xff]   ;;  %v1371_v14 = vpop.permute.xlu1 %1370 }
 0x50e   :  { %v1262_v35 = vpack.c.bf16 %v2505_v34, %v2505_v34  ;;  %vm1372_vm14 = vcmp.eq.s32.totalorder %v1371_v14, 1  ;;  %v2711_v14 = vld [vmem:[#allocation28_spill] sm:$0xff] }
 0x510   :  { %1296 = vmatmul.mubr.bf16.vlgmr.msra.gmra.mxu0 %v1262_v35  ;;  %1337 = vmatmul.mubr.bf16.vlgmr.msra.gmra.mxu1 %v1262_v35 }
 0x511   :  { %1381 = vmatpush1.bf16.msra.mxu0 %v2454_v32  ;;  %1422 = vmatpush1.bf16.msra.mxu1 %v2457_v55 }
 0x512   :  { %1382 = vmatprep.subr.bf16.mxu0 %v2511_v13  ;;  %1423 = vmatprep.subr.bf16.mxu1 %v2514_v31 }
 0x513   :  { %1412 = vmatprep.mubr.bf16.mxu0 %v2691_v18  ;;  %1453 = vmatprep.mubr.bf16.mxu1 %v2691_v18 }
 0x515   :  { %1383 = vmatpush1.bf16.msra.mxu0 %v2519_v11  ;;  %1424 = vmatpush1.bf16.msra.mxu1 %v2522_v1 }
 0x516   :  { %1384 = vmatprep.subr.bf16.mxu0 %v2525_v23  ;;  %1425 = vmatprep.subr.bf16.mxu1 %v2528_v25 }
 0x519   :  { %1385 = vmatpush1.bf16.msra.mxu0 %v2531_v15  ;;  %1426 = vmatpush1.bf16.msra.mxu1 %v2534_v12 }
 0x51a   :  { %1386 = vmatprep.subr.bf16.mxu0 %v2537_v19  ;;  %1427 = vmatprep.subr.bf16.mxu1 %v2540_v10 }
 0x51d   :  { %1387 = vmatpush1.bf16.msra.mxu0 %v2543_v54  ;;  %1428 = vmatpush1.bf16.msra.mxu1 %v2546_v21 }
 0x51e   :  { %1388 = vmatprep.subr.bf16.mxu0 %v2549_v20  ;;  %1429 = vmatprep.subr.bf16.mxu1 %v2552_v27 }
 0x521   :  { %1389 = vmatpush1.bf16.msra.mxu0 %v2555_v37  ;;  %1430 = vmatpush1.bf16.msra.mxu1 %v2558_v38 }
 0x522   :  { %1390 = vmatprep.subr.bf16.mxu0 %v2561_v30  ;;  %1431 = vmatprep.subr.bf16.mxu1 %v2564_v63 }
 0x525   :  { %1391 = vmatpush1.bf16.msra.mxu0 %v2567_v29  ;;  %1432 = vmatpush1.bf16.msra.mxu1 %v2570_v24 }
 0x526   :  { %1392 = vmatprep.subr.bf16.mxu0 %v2573_v41  ;;  %1433 = vmatprep.subr.bf16.mxu1 %v2576_v42 }
 0x529   :  { %1393 = vmatpush1.bf16.msra.mxu0 %v2579_v43  ;;  %1434 = vmatpush1.bf16.msra.mxu1 %v2582_v44 }
 0x52a   :  { %1394 = vmatprep.subr.bf16.mxu0 %v2585_v46  ;;  %1435 = vmatprep.subr.bf16.mxu1 %v2588_v47 }
 0x52d   :  { %1395 = vmatpush1.bf16.msra.mxu0 %v2591_v48  ;;  %1436 = vmatpush1.bf16.msra.mxu1 %v2594_v49 }
 0x52e   :  { %1497 = vmatprep.subr.bf16.mxu0 %v2490_v39  ;;  %1538 = vmatprep.subr.bf16.mxu1 %v2493_v40  ;;  %v2704_v39 = vld [vmem:[#allocation20_spill] sm:$0xff] }
 0x5d0   :  { %v1297_v50 = vpop.f32.mrf.mxu0  ;;  %v1338_v51 = vpop.f32.mrf.mxu1 }
 0x5d1   :  { %v1345_v53 = vadd.f32 %v1297_v50, %v2701_v52  ;;  %v1347_v40 = vadd.f32 %v1338_v51, %v2704_v39 }
 0x5d2   :  { %v1299_v56 = vpop.f32.mrf.mxu0  ;;  %v1340_v57 = vpop.f32.mrf.mxu1 }
 0x5d3   :  { %v1349_v59 = vmul.f32 0.5, %v1345_v53  ;;  %v1346_v61 = vadd.f32 %v1299_v56, %v2702_v60  ;;  %v1348_v5 = vadd.f32 %v1340_v57, %v2703_v4  ;;  %v1351_v8 = vmul.f32 0.5, %v1347_v40 }
 0x5d4   :  { %v1301_v62 = vpop.f32.mrf.mxu0  ;;  %v1342_v0 = vpop.f32.mrf.mxu1 }
 0x5d5   :  { %1867 = vtanh.f32 %v1349_v59  ;;  %v1350_v2 = vmul.f32 0.5, %v1346_v61 }
 0x5d6   :  { %v1302_v6 = vpop.f32.mrf.mxu0  ;;  %v1343_v7 = vpop.f32.mrf.mxu1 }
 0x5d7   :  { %1869 = vtanh.f32 %v1350_v2  ;;  %v2709_v7 = vld [vmem:[#allocation27_spill] sm:$0xff] }
 0x5d8   :  { %1871 = vtanh.f32 %v1348_v5 }
 0x5d9   :  { %1873 = vtanh.f32 %v1351_v8 }
 0x5e2   :  { %v1868_v9 = vpop.eup %1867 }
 0x5e3   :  { %v1355_v45 = vmul.f32 0.5, %v1868_v9 }
 0x5e4   :  { %v1870_v16 = vpop.eup %1869 }
 0x5e5   :  { %v1358_v33 = vadd.f32 0.5, %v1355_v45  ;;  %v1356_v22 = vmul.f32 0.5, %v1870_v16  ;;  %v1872_v36 = vpop.eup %1871 }
 0x5e6   :  { %v1874_v51 = vpop.eup %1873 }
 0x5e7   :  { %v1359_v17 = vadd.f32 0.5, %v1356_v22  ;;  %v1363_v26 = vmul.f32 %v1872_v36, %v1358_v33  ;;  %v1357_v52 = vmul.f32 0.5, %v1874_v51  ;;  %v2710_v36 = vld [vmem:[#allocation29_spill] sm:$0xff] }
 0x5e9   :  { %v1362_v58 = vmul.f32 %v1359_v17, %v2502_v28  ;;  %v1360_v53 = vadd.f32 0.5, %v1357_v52 }
 0x5eb   :  { %v1364_v35 = vadd.f32 %v1363_v26, %v1362_v58 }
 0x5ed   :  { %1875 = vtanh.f32 %v1364_v35  ;;  %v2605_v50 = vsel %vm1372_vm14, %v1364_v35, %v2502_v28 }
 0x5fa   :  { %v1876_v56 = vpop.eup %1875 }
 0x5fb   :  { %v1366_v57 = vmul.f32 %v1876_v56, %v1360_v53 }
 0x5fd   :  { %v2608_v59 = vsel %vm1372_vm14, %v1366_v57, %v2505_v34 }
 0x5fe   :  { %v1379_v60 = vpack.c.bf16 %v2608_v59, %v2608_v59 }
 0x600   :  { %1413 = vmatmul.mubr.bf16.vlgmr.msra.gmra.mxu0 %v1379_v60  ;;  %1454 = vmatmul.mubr.bf16.vlgmr.msra.gmra.mxu1 %v1379_v60 }
 0x601   :  { %1498 = vmatpush1.bf16.msra.mxu0 %v2454_v32  ;;  %1539 = vmatpush1.bf16.msra.mxu1 %v2457_v55  ;;  %v2705_v55 = vld [vmem:[#allocation23_spill] sm:$0xff] }
 0x602   :  { %1499 = vmatprep.subr.bf16.mxu0 %v2511_v13  ;;  %1540 = vmatprep.subr.bf16.mxu1 %v2514_v31 }
 0x603   :  { %1529 = vmatprep.mubr.bf16.mxu0 %v2691_v18  ;;  %1570 = vmatprep.mubr.bf16.mxu1 %v2691_v18 }
 0x605   :  { %1500 = vmatpush1.bf16.msra.mxu0 %v2519_v11  ;;  %1541 = vmatpush1.bf16.msra.mxu1 %v2522_v1  ;;  %v2706_v11 = vld [vmem:[#allocation25_spill] sm:$0xff] }
 0x606   :  { %1501 = vmatprep.subr.bf16.mxu0 %v2525_v23  ;;  %1542 = vmatprep.subr.bf16.mxu1 %v2528_v25 }
 0x609   :  { %1502 = vmatpush1.bf16.msra.mxu0 %v2531_v15  ;;  %1543 = vmatpush1.bf16.msra.mxu1 %v2534_v12  ;;  %v2707_v12 = vld [vmem:[#allocation26_spill] sm:$0xff] }
 0x60a   :  { %1503 = vmatprep.subr.bf16.mxu0 %v2537_v19  ;;  %1544 = vmatprep.subr.bf16.mxu1 %v2540_v10 }
 0x60d   :  { %1504 = vmatpush1.bf16.msra.mxu0 %v2543_v54  ;;  %1545 = vmatpush1.bf16.msra.mxu1 %v2546_v21  ;;  %v2708_v21 = vld [vmem:[#allocation24_spill] sm:$0xff] }
 0x60e   :  { %1505 = vmatprep.subr.bf16.mxu0 %v2549_v20  ;;  %1546 = vmatprep.subr.bf16.mxu1 %v2552_v27 }
 0x611   :  { %1506 = vmatpush1.bf16.msra.mxu0 %v2555_v37  ;;  %1547 = vmatpush1.bf16.msra.mxu1 %v2558_v38 }
 0x612   :  { %1507 = vmatprep.subr.bf16.mxu0 %v2561_v30  ;;  %1548 = vmatprep.subr.bf16.mxu1 %v2564_v63 }
 0x615   :  { %1508 = vmatpush1.bf16.msra.mxu0 %v2567_v29  ;;  %1549 = vmatpush1.bf16.msra.mxu1 %v2570_v24 }
 0x616   :  { %1509 = vmatprep.subr.bf16.mxu0 %v2573_v41  ;;  %1550 = vmatprep.subr.bf16.mxu1 %v2576_v42 }
 0x619   :  { %1510 = vmatpush1.bf16.msra.mxu0 %v2579_v43  ;;  %1551 = vmatpush1.bf16.msra.mxu1 %v2582_v44  ;;  %v1488_v43 = vpop.permute.xlu0 %1487 }
 0x61a   :  { %1511 = vmatprep.subr.bf16.mxu0 %v2585_v46  ;;  %1552 = vmatprep.subr.bf16.mxu1 %v2588_v47  ;;  %vm1489_vm15 = vcmp.eq.s32.totalorder %v1488_v43, 1 }
 0x61d   :  { %1512 = vmatpush1.bf16.msra.mxu0 %v2591_v48  ;;  %1553 = vmatpush1.bf16.msra.mxu1 %v2594_v49 }
 0x6c0   :  { %v1414_v18 = vpop.f32.mrf.mxu0  ;;  %v1455_v32 = vpop.f32.mrf.mxu1 }
 0x6c1   :  { %v1462_v28 = vadd.f32 %v1414_v18, %v2705_v55  ;;  %v1464_v20 = vadd.f32 %v1455_v32, %v2708_v21 }
 0x6c2   :  { %v1416_v34 = vpop.f32.mrf.mxu0  ;;  %v1457_v13 = vpop.f32.mrf.mxu1 }
 0x6c3   :  { %v1466_v31 = vmul.f32 0.5, %v1462_v28  ;;  %v1463_v1 = vadd.f32 %v1416_v34, %v2706_v11  ;;  %v1465_v19 = vadd.f32 %v1457_v13, %v2707_v12  ;;  %v1468_v27 = vmul.f32 0.5, %v1464_v20  ;;  %v1605_v34 = vpop.permute.xlu1 %1604 }
 0x6c4   :  { %v1418_v23 = vpop.f32.mrf.mxu0  ;;  %v1459_v25 = vpop.f32.mrf.mxu1  ;;  %vm1606_vm0 = vcmp.eq.s32.totalorder %v1605_v34, 1 }
 0x6c5   :  { %1877 = vtanh.f32 %v1466_v31  ;;  %v1467_v15 = vmul.f32 0.5, %v1463_v1  ;;  %v1708_v1 = vld [vmem:[%s2666_s5] ss:$0 sm:$0xff] }
 0x6c6   :  { %v1419_v10 = vpop.f32.mrf.mxu0  ;;  %v1460_v54 = vpop.f32.mrf.mxu1 }
 0x6c7   :  { %1879 = vtanh.f32 %v1467_v15  ;;  %v1709_v15 = vld [vmem:[#allocation3] ss:$0 sm:$0xff] }
 0x6c8   :  { %1881 = vtanh.f32 %v1465_v19 }
 0x6c9   :  { %1883 = vtanh.f32 %v1468_v27 }
 0x6d2   :  { %v1878_v37 = vpop.eup %1877 }
 0x6d3   :  { %v1472_v38 = vmul.f32 0.5, %v1878_v37 }
 0x6d4   :  { %v1880_v30 = vpop.eup %1879 }
 0x6d5   :  { %v1475_v63 = vadd.f32 0.5, %v1472_v38  ;;  %v1473_v29 = vmul.f32 0.5, %v1880_v30  ;;  %v1882_v24 = vpop.eup %1881 }
 0x6d6   :  { %v1884_v48 = vpop.eup %1883 }
 0x6d7   :  { %v1476_v41 = vadd.f32 0.5, %v1473_v29  ;;  %v1480_v42 = vmul.f32 %v1882_v24, %v1475_v63  ;;  %v1474_v49 = vmul.f32 0.5, %v1884_v48 }
 0x6d9   :  { %v1479_v44 = vmul.f32 %v1476_v41, %v2605_v50  ;;  %v1477_v61 = vadd.f32 0.5, %v1474_v49 }
 0x6db   :  { %v1481_v46 = vadd.f32 %v1480_v42, %v1479_v44 }
 0x6dd   :  { %1885 = vtanh.f32 %v1481_v46  ;;  %v1490_v47 = vsel %vm1489_vm15, %v1481_v46, %v2605_v50 }
 0x6ea   :  { %v1886_v62 = vpop.eup %1885 }
 0x6eb   :  { %v1483_v0 = vmul.f32 %v1886_v62, %v1477_v61 }
 0x6ed   :  { %v1491_v2 = vsel %vm1489_vm15, %v1483_v0, %v2608_v59 }
 0x6ee   :  { %v1496_v4 = vpack.c.bf16 %v1491_v2, %v1491_v2 }
 0x6f0   :  { %1530 = vmatmul.mubr.bf16.vlgmr.msra.gmra.mxu0 %v1496_v4  ;;  %1571 = vmatmul.mubr.bf16.vlgmr.msra.gmra.mxu1 %v1496_v4 }
 0x7b0   :  { %v1531_v5 = vpop.f32.mrf.mxu0  ;;  %v1572_v6 = vpop.f32.mrf.mxu1 }
 0x7b1   :  { %v1579_v39 = vadd.f32 %v1531_v5, %v2709_v7  ;;  %v1581_v35 = vadd.f32 %v1572_v6, %v2711_v14 }
 0x7b2   :  { %v1533_v40 = vpop.f32.mrf.mxu0  ;;  %v1574_v8 = vpop.f32.mrf.mxu1 }
 0x7b3   :  { %v1583_v9 = vmul.f32 0.5, %v1579_v39  ;;  %v1580_v45 = vadd.f32 %v1533_v40, %v2279_v3  ;;  %v1582_v17 = vadd.f32 %v1574_v8, %v2710_v36  ;;  %v1585_v50 = vmul.f32 0.5, %v1581_v35 }
 0x7b4   :  { %v1535_v16 = vpop.f32.mrf.mxu0  ;;  %v1576_v33 = vpop.f32.mrf.mxu1 }
 0x7b5   :  { %1887 = vtanh.f32 %v1583_v9  ;;  %v1584_v22 = vmul.f32 0.5, %v1580_v45 }
 0x7b6   :  { %v1536_v26 = vpop.f32.mrf.mxu0  ;;  %v1577_v58 = vpop.f32.mrf.mxu1 }
 0x7b7   :  { %1889 = vtanh.f32 %v1584_v22 }
 0x7b8   :  { %1891 = vtanh.f32 %v1582_v17 }
 0x7b9   :  { %1893 = vtanh.f32 %v1585_v50 }
 0x7c2   :  { %v1888_v51 = vpop.eup %1887 }
 0x7c3   :  { %v1589_v52 = vmul.f32 0.5, %v1888_v51 }
 0x7c4   :  { %v1890_v53 = vpop.eup %1889 }
 0x7c5   :  { %v1592_v56 = vadd.f32 0.5, %v1589_v52  ;;  %v1590_v57 = vmul.f32 0.5, %v1890_v53  ;;  %v1892_v3 = vpop.eup %1891 }
 0x7c6   :  { %v1894_v55 = vpop.eup %1893 }
 0x7c7   :  { %v1593_v59 = vadd.f32 0.5, %v1590_v57  ;;  %v1597_v60 = vmul.f32 %v1892_v3, %v1592_v56  ;;  %v1591_v28 = vmul.f32 0.5, %v1894_v55 }
 0x7c9   :  { %v1596_v18 = vmul.f32 %v1593_v59, %v1490_v47  ;;  %v1594_v13 = vadd.f32 0.5, %v1591_v28 }
 0x7cb   :  { %v1598_v32 = vadd.f32 %v1597_v60, %v1596_v18 }
 0x7cd   :  { %1895 = vtanh.f32 %v1598_v32 }
 0x7da   :  { %v1896_v31 = vpop.eup %1895 }
 0x7db   :  { %v1600_v11 = vmul.f32 %v1896_v31, %v1594_v13 }
 0x7dd   :  { %v1607_v23 = vsel %vm1606_vm0, %v1600_v11, %v1491_v2 }
 0x7de   :  { %v1615_v25 = vmul.f32 %v1708_v1, %v1607_v23 }
 0x7e0   :  { %1616 = vadd.xlane.f32.xlu0 %v1615_v25 }
 0x869   :  { %v1617_v12 = vpop.xlane.xlu0 %1616 }
 0x86a   :  { %v1625_v19 = vadd.f32 %v1709_v15, %v1617_v12 }
 0x86c   :  { %1627 = vst.msk [vmem:[%s2668_s7] sm:$0xff] %vm1626_vm1, %v1625_v19 }
 0x86d   :  { %1632 = vsyncpa [#allocation5], 1 }
 0x86e   :  { %1633 = vsyncpa [#allocation7], 1 }

</bundles_post_ra>
